<compile_context>
chip_gen: v7x
topology: tpu7x:2x2x1
jax: 0.10.0
libtpu: 0.0.40
codegen_flags: <defaults>
</compile_context>

<pallas_src>
import functools

import jax
import jax.numpy as jnp
from jax.experimental import pallas as pl
from jax.experimental.pallas import tpu as pltpu


def conv_gap_fc_kernel(x_ref, w1_ref, b1_ref, w2_ref, b2_ref, out_ref, *, h, w):
    """Fused 3x3 conv (as 9 shifted matmuls) + ReLU + global-avg-pool + FC.

    x_ref  : (1, h+2, w+2, ch) f32  spatially padded NHWC image (one batch elem)
    w1_ref : (9, ch, C)        f32  conv weight, tap-major
    b1_ref : (1, C)            f32  conv bias
    w2_ref : (C, NC_PAD)       f32  fc weight (zero-padded to 128 lanes)
    b2_ref : (1, NC_PAD)       f32  fc bias   (zero-padded)
    out_ref: (1, 1, NC_PAD)    f32  logits for this batch element
    """
    ch = x_ref.shape[-1]
    hw = h * w

    x = x_ref[0]                                           # (h+2, w+2, ch)

    # Conv2d(pad=1, stride=1): sum over the 9 kernel taps of a flattened
    # (HW, ch) @ (ch, C) matmul.  bf16 operands, f32 MXU accumulation.
    acc = None
    for t in range(9):
        i, j = t // 3, t % 3
        tap = x[i:i + h, j:j + w, :].reshape(hw, ch)       # (hw, ch), static slice
        contrib = jnp.dot(tap.astype(jnp.bfloat16),
                          w1_ref[t].astype(jnp.bfloat16),
                          preferred_element_type=jnp.float32)
        acc = contrib if acc is None else acc + contrib    # (hw, C) f32

    conv = jnp.maximum(acc + b1_ref[...], 0.0)             # bias + ReLU, (hw, C)

    # Global average pool as an MXU matmul: (1, hw) @ (hw, C) -> (1, C).
    pool_w = jnp.full((1, hw), 1.0 / hw, dtype=jnp.float32)
    pooled = jnp.dot(pool_w, conv, preferred_element_type=jnp.float32)

    # Final linear classifier (lane-dense, zero-padded to NC_PAD columns).
    logits = jnp.dot(pooled, w2_ref[...],
                     preferred_element_type=jnp.float32) + b2_ref[...]
    out_ref[0] = logits.astype(out_ref.dtype)              # (1, NC_PAD)


def prepare_params(w_conv, b_conv, w_fc, b_fc, nc_pad=128):
    """PyTorch-convention params -> kernel layout.

    w_conv: (C, ch, 3, 3), b_conv: (C,), w_fc: (NC, C), b_fc: (NC,)
    """
    c, ch, kh, kw = w_conv.shape
    nc = w_fc.shape[0]
    # (C, ch, kh, kw) -> (kh, kw, ch, C) -> (kh*kw, ch, C): tap-major, ch-minor.
    w1 = jnp.transpose(w_conv, (2, 3, 1, 0)).reshape(kh * kw, ch, c)
    w1 = w1.astype(jnp.float32)
    b1 = b_conv.reshape(1, c).astype(jnp.float32)
    # Pad n_class to a lane-dense width; padded columns are zero.
    w2 = jnp.zeros((c, nc_pad), jnp.float32).at[:, :nc].set(w_fc.T)
    b2 = jnp.zeros((1, nc_pad), jnp.float32).at[:, :nc].set(b_fc)
    return w1, b1, w2, b2


def manual_model_forward(x, params, n_class):
    """Forward pass of ManualModel: logits = model(xbatch). x is NCHW."""
    w1, b1, w2, b2 = params
    n, ch, h, w = x.shape
    nc_pad = w2.shape[1]

    # Spatial zero-pad + NCHW -> NHWC.  ~1x input bytes (no 9x im2col in HBM).
    xp = jnp.pad(x.astype(jnp.float32), ((0, 0), (0, 0), (1, 1), (1, 1)))
    xp = jnp.transpose(xp, (0, 2, 3, 1))                   # (N, h+2, w+2, ch)

    kernel = functools.partial(conv_gap_fc_kernel, h=h, w=w)
    out = pl.pallas_call(
        kernel,
        out_shape=jax.ShapeDtypeStruct((n, 1, nc_pad), jnp.float32),
        grid_spec=pltpu.PrefetchScalarGridSpec(
            num_scalar_prefetch=0,
            grid=(n,),                                     # one image per grid step
            in_specs=[
                pl.BlockSpec((1, h + 2, w + 2, ch), lambda b: (b, 0, 0, 0)),
                pl.BlockSpec(w1.shape, lambda b: (0, 0, 0)),
                pl.BlockSpec(b1.shape, lambda b: (0, 0)),
                pl.BlockSpec(w2.shape, lambda b: (0, 0)),
                pl.BlockSpec(b2.shape, lambda b: (0, 0)),
            ],
            out_specs=pl.BlockSpec((1, 1, nc_pad), lambda b: (b, 0, 0)),
        ),
        compiler_params=pltpu.CompilerParams(
            dimension_semantics=("parallel",),             # shard batch across TCs (v7x)
        ),
    )(xp, w1, b1, w2, b2)

    return out.reshape(n, nc_pad)[:, :n_class]


def reference_forward(x, w_conv, b_conv, w_fc, b_fc, use_bf16_matmul=True):
    """Pure-JAX reference.  With use_bf16_matmul=True it mirrors the kernel's
    bf16 conv-operand rounding (f32 accumulation); with False it is full f32."""
    n, ch, h, w = x.shape
    xp = jnp.pad(x.astype(jnp.float32), ((0, 0), (0, 0), (1, 1), (1, 1)))
    taps = [xp[:, :, i:i + h, j:j + w] for i in range(3) for j in range(3)]
    patches = jnp.stack(taps, axis=1)                      # (N, 9, ch, H, W)
    patches = patches.transpose(0, 3, 4, 1, 2).reshape(n, h * w, 9 * ch)
    w1 = jnp.transpose(w_conv, (2, 3, 1, 0)).reshape(9 * ch, -1)
    if use_bf16_matmul:
        patches = patches.astype(jnp.bfloat16)
        w1 = w1.astype(jnp.bfloat16)
    conv = jnp.einsum("nhk,kc->nhc", patches, w1,
                      preferred_element_type=jnp.float32)
    conv = jnp.maximum(conv + b_conv[None, None, :], 0.0)
    pooled = jnp.mean(conv, axis=1)
    return pooled @ w_fc.T + b_fc[None, :]


if __name__ == "__main__":
    # Small shapes consistent with the module: batch=2, ch=3 input channels,
    # 16x16 spatial, hidden conv width c=32, n_class=10.
    N, CH, H, W = 2, 3, 16, 16
    C, N_CLASS = 32, 10

    key = jax.random.PRNGKey(0)
    kx, k1, k2, k3, k4 = jax.random.split(key, 5)
    x = jax.random.normal(kx, (N, CH, H, W), jnp.float32)          # NCHW, like PyTorch
    w_conv = jax.random.normal(k1, (C, CH, 3, 3), jnp.float32) * 0.1
    b_conv = jax.random.normal(k2, (C,), jnp.float32) * 0.01
    w_fc = jax.random.normal(k3, (N_CLASS, C), jnp.float32) * 0.1
    b_fc = jax.random.normal(k4, (N_CLASS,), jnp.float32) * 0.01

    params = prepare_params(w_conv, b_conv, w_fc, b_fc)

    forward = jax.jit(functools.partial(manual_model_forward, n_class=N_CLASS))
    logits = forward(x, params)
    logits = jax.block_until_ready(logits)
    assert logits.shape == (N, N_CLASS)

    # Tight check vs a reference using the same bf16 operand rounding.
    ref_bf16 = reference_forward(x, w_conv, b_conv, w_fc, b_fc, use_bf16_matmul=True)
    assert jnp.allclose(logits, ref_bf16, atol=2e-3, rtol=2e-3), \
        "mismatch vs bf16-consistent reference"

    # Looser sanity check vs the full-f32 module semantics.
    ref_f32 = reference_forward(x, w_conv, b_conv, w_fc, b_fc, use_bf16_matmul=False)
    assert jnp.allclose(logits, ref_f32, atol=2e-2, rtol=2e-2), \
        "mismatch vs f32 reference"

    print("KERNEL_OK")
</pallas_src>

<mosaic_0001>
module attributes {stable_mosaic.version = 11 : i64} {
  func.func @conv_gap_fc_kernel(%arg0: i32, %arg1: memref<1x18x18x3xf32, #tpu.memory_space<vmem>>, %arg2: memref<9x3x32xf32, #tpu.memory_space<vmem>>, %arg3: memref<1x32xf32, #tpu.memory_space<vmem>>, %arg4: memref<32x128xf32, #tpu.memory_space<vmem>>, %arg5: memref<1x128xf32, #tpu.memory_space<vmem>>, %arg6: memref<1x1x128xf32, #tpu.memory_space<vmem>>) attributes {dimension_semantics = [#tpu.dimension_semantics<parallel>], iteration_bounds = array<i64: 2>, scalar_prefetch = 0 : i64, scratch_operands = 0 : i64, tpu.core_type = #tpu.core_type<tc>, window_params = [{transform_indices = @transform_0, window_bounds = array<i64: 1, 18, 18, 3>}, {pipeline_mode = #tpu.pipeline_mode<synchronous>, transform_indices = @transform_1, window_bounds = array<i64: 9, 3, 32>}, {pipeline_mode = #tpu.pipeline_mode<synchronous>, transform_indices = @transform_2, window_bounds = array<i64: 1, 32>}, {pipeline_mode = #tpu.pipeline_mode<synchronous>, transform_indices = @transform_3, window_bounds = array<i64: 32, 128>}, {pipeline_mode = #tpu.pipeline_mode<synchronous>, transform_indices = @transform_4, window_bounds = array<i64: 1, 128>}, {transform_indices = @transform_5, window_bounds = array<i64: 1, 1, 128>}]} {
    %c0 = arith.constant 0 : index
    %c0_0 = arith.constant 0 : index
    %c0_1 = arith.constant 0 : index
    %c0_2 = arith.constant 0 : index
    %0 = vector.load %arg1[%c0, %c0_0, %c0_1, %c0_2] : memref<1x18x18x3xf32, #tpu.memory_space<vmem>>, vector<1x18x18x3xf32>
    %1 = vector.shape_cast %0 : vector<1x18x18x3xf32> to vector<18x18x3xf32>
    %2 = vector.extract_strided_slice %1 {offsets = [0, 0, 0], sizes = [16, 16, 3], strides = [1, 1, 1]} : vector<18x18x3xf32> to vector<16x16x3xf32>
    %3 = vector.shape_cast %2 : vector<16x16x3xf32> to vector<256x3xf32>
    %4 = arith.truncf %3 : vector<256x3xf32> to vector<256x3xbf16>
    %c0_3 = arith.constant 0 : index
    %c0_4 = arith.constant 0 : index
    %c0_5 = arith.constant 0 : index
    %5 = vector.load %arg2[%c0_3, %c0_4, %c0_5] : memref<9x3x32xf32, #tpu.memory_space<vmem>>, vector<1x3x32xf32>
    %6 = vector.shape_cast %5 : vector<1x3x32xf32> to vector<3x32xf32>
    %7 = arith.truncf %6 : vector<3x32xf32> to vector<3x32xbf16>
    %cst = arith.constant dense<0.000000e+00> : vector<256x32xf32>
    %8 = tpu.matmul %4, %7, %cst {dimension_numbers = #tpu.dot_dimension_numbers<[1], [0], [0], [1], [0, 0, 1, 1], [], []>} : vector<256x3xbf16>, vector<3x32xbf16>, vector<256x32xf32> -> vector<256x32xf32>
    %9 = vector.extract_strided_slice %1 {offsets = [0, 1, 0], sizes = [16, 16, 3], strides = [1, 1, 1]} : vector<18x18x3xf32> to vector<16x16x3xf32>
    %10 = vector.shape_cast %9 : vector<16x16x3xf32> to vector<256x3xf32>
    %11 = arith.truncf %10 : vector<256x3xf32> to vector<256x3xbf16>
    %c1 = arith.constant 1 : index
    %c0_6 = arith.constant 0 : index
    %c0_7 = arith.constant 0 : index
    %12 = vector.load %arg2[%c1, %c0_6, %c0_7] : memref<9x3x32xf32, #tpu.memory_space<vmem>>, vector<1x3x32xf32>
    %13 = vector.shape_cast %12 : vector<1x3x32xf32> to vector<3x32xf32>
    %14 = arith.truncf %13 : vector<3x32xf32> to vector<3x32xbf16>
    %cst_8 = arith.constant dense<0.000000e+00> : vector<256x32xf32>
    %15 = tpu.matmul %11, %14, %cst_8 {dimension_numbers = #tpu.dot_dimension_numbers<[1], [0], [0], [1], [0, 0, 1, 1], [], []>} : vector<256x3xbf16>, vector<3x32xbf16>, vector<256x32xf32> -> vector<256x32xf32>
    %16 = arith.addf %8, %15 : vector<256x32xf32>
    %17 = vector.extract_strided_slice %1 {offsets = [0, 2, 0], sizes = [16, 16, 3], strides = [1, 1, 1]} : vector<18x18x3xf32> to vector<16x16x3xf32>
    %18 = vector.shape_cast %17 : vector<16x16x3xf32> to vector<256x3xf32>
    %19 = arith.truncf %18 : vector<256x3xf32> to vector<256x3xbf16>
    %c2 = arith.constant 2 : index
    %c0_9 = arith.constant 0 : index
    %c0_10 = arith.constant 0 : index
    %20 = vector.load %arg2[%c2, %c0_9, %c0_10] : memref<9x3x32xf32, #tpu.memory_space<vmem>>, vector<1x3x32xf32>
    %21 = vector.shape_cast %20 : vector<1x3x32xf32> to vector<3x32xf32>
    %22 = arith.truncf %21 : vector<3x32xf32> to vector<3x32xbf16>
    %cst_11 = arith.constant dense<0.000000e+00> : vector<256x32xf32>
    %23 = tpu.matmul %19, %22, %cst_11 {dimension_numbers = #tpu.dot_dimension_numbers<[1], [0], [0], [1], [0, 0, 1, 1], [], []>} : vector<256x3xbf16>, vector<3x32xbf16>, vector<256x32xf32> -> vector<256x32xf32>
    %24 = arith.addf %16, %23 : vector<256x32xf32>
    %25 = vector.extract_strided_slice %1 {offsets = [1, 0, 0], sizes = [16, 16, 3], strides = [1, 1, 1]} : vector<18x18x3xf32> to vector<16x16x3xf32>
    %26 = vector.shape_cast %25 : vector<16x16x3xf32> to vector<256x3xf32>
    %27 = arith.truncf %26 : vector<256x3xf32> to vector<256x3xbf16>
    %c3 = arith.constant 3 : index
    %c0_12 = arith.constant 0 : index
    %c0_13 = arith.constant 0 : index
    %28 = vector.load %arg2[%c3, %c0_12, %c0_13] : memref<9x3x32xf32, #tpu.memory_space<vmem>>, vector<1x3x32xf32>
    %29 = vector.shape_cast %28 : vector<1x3x32xf32> to vector<3x32xf32>
    %30 = arith.truncf %29 : vector<3x32xf32> to vector<3x32xbf16>
    %cst_14 = arith.constant dense<0.000000e+00> : vector<256x32xf32>
    %31 = tpu.matmul %27, %30, %cst_14 {dimension_numbers = #tpu.dot_dimension_numbers<[1], [0], [0], [1], [0, 0, 1, 1], [], []>} : vector<256x3xbf16>, vector<3x32xbf16>, vector<256x32xf32> -> vector<256x32xf32>
    %32 = arith.addf %24, %31 : vector<256x32xf32>
    %33 = vector.extract_strided_slice %1 {offsets = [1, 1, 0], sizes = [16, 16, 3], strides = [1, 1, 1]} : vector<18x18x3xf32> to vector<16x16x3xf32>
    %34 = vector.shape_cast %33 : vector<16x16x3xf32> to vector<256x3xf32>
    %35 = arith.truncf %34 : vector<256x3xf32> to vector<256x3xbf16>
    %c4 = arith.constant 4 : index
    %c0_15 = arith.constant 0 : index
    %c0_16 = arith.constant 0 : index
    %36 = vector.load %arg2[%c4, %c0_15, %c0_16] : memref<9x3x32xf32, #tpu.memory_space<vmem>>, vector<1x3x32xf32>
    %37 = vector.shape_cast %36 : vector<1x3x32xf32> to vector<3x32xf32>
    %38 = arith.truncf %37 : vector<3x32xf32> to vector<3x32xbf16>
    %cst_17 = arith.constant dense<0.000000e+00> : vector<256x32xf32>
    %39 = tpu.matmul %35, %38, %cst_17 {dimension_numbers = #tpu.dot_dimension_numbers<[1], [0], [0], [1], [0, 0, 1, 1], [], []>} : vector<256x3xbf16>, vector<3x32xbf16>, vector<256x32xf32> -> vector<256x32xf32>
    %40 = arith.addf %32, %39 : vector<256x32xf32>
    %41 = vector.extract_strided_slice %1 {offsets = [1, 2, 0], sizes = [16, 16, 3], strides = [1, 1, 1]} : vector<18x18x3xf32> to vector<16x16x3xf32>
    %42 = vector.shape_cast %41 : vector<16x16x3xf32> to vector<256x3xf32>
    %43 = arith.truncf %42 : vector<256x3xf32> to vector<256x3xbf16>
    %c5 = arith.constant 5 : index
    %c0_18 = arith.constant 0 : index
    %c0_19 = arith.constant 0 : index
    %44 = vector.load %arg2[%c5, %c0_18, %c0_19] : memref<9x3x32xf32, #tpu.memory_space<vmem>>, vector<1x3x32xf32>
    %45 = vector.shape_cast %44 : vector<1x3x32xf32> to vector<3x32xf32>
    %46 = arith.truncf %45 : vector<3x32xf32> to vector<3x32xbf16>
    %cst_20 = arith.constant dense<0.000000e+00> : vector<256x32xf32>
    %47 = tpu.matmul %43, %46, %cst_20 {dimension_numbers = #tpu.dot_dimension_numbers<[1], [0], [0], [1], [0, 0, 1, 1], [], []>} : vector<256x3xbf16>, vector<3x32xbf16>, vector<256x32xf32> -> vector<256x32xf32>
    %48 = arith.addf %40, %47 : vector<256x32xf32>
    %49 = vector.extract_strided_slice %1 {offsets = [2, 0, 0], sizes = [16, 16, 3], strides = [1, 1, 1]} : vector<18x18x3xf32> to vector<16x16x3xf32>
    %50 = vector.shape_cast %49 : vector<16x16x3xf32> to vector<256x3xf32>
    %51 = arith.truncf %50 : vector<256x3xf32> to vector<256x3xbf16>
    %c6 = arith.constant 6 : index
    %c0_21 = arith.constant 0 : index
    %c0_22 = arith.constant 0 : index
    %52 = vector.load %arg2[%c6, %c0_21, %c0_22] : memref<9x3x32xf32, #tpu.memory_space<vmem>>, vector<1x3x32xf32>
    %53 = vector.shape_cast %52 : vector<1x3x32xf32> to vector<3x32xf32>
    %54 = arith.truncf %53 : vector<3x32xf32> to vector<3x32xbf16>
    %cst_23 = arith.constant dense<0.000000e+00> : vector<256x32xf32>
    %55 = tpu.matmul %51, %54, %cst_23 {dimension_numbers = #tpu.dot_dimension_numbers<[1], [0], [0], [1], [0, 0, 1, 1], [], []>} : vector<256x3xbf16>, vector<3x32xbf16>, vector<256x32xf32> -> vector<256x32xf32>
    %56 = arith.addf %48, %55 : vector<256x32xf32>
    %57 = vector.extract_strided_slice %1 {offsets = [2, 1, 0], sizes = [16, 16, 3], strides = [1, 1, 1]} : vector<18x18x3xf32> to vector<16x16x3xf32>
    %58 = vector.shape_cast %57 : vector<16x16x3xf32> to vector<256x3xf32>
    %59 = arith.truncf %58 : vector<256x3xf32> to vector<256x3xbf16>
    %c7 = arith.constant 7 : index
    %c0_24 = arith.constant 0 : index
    %c0_25 = arith.constant 0 : index
    %60 = vector.load %arg2[%c7, %c0_24, %c0_25] : memref<9x3x32xf32, #tpu.memory_space<vmem>>, vector<1x3x32xf32>
    %61 = vector.shape_cast %60 : vector<1x3x32xf32> to vector<3x32xf32>
    %62 = arith.truncf %61 : vector<3x32xf32> to vector<3x32xbf16>
    %cst_26 = arith.constant dense<0.000000e+00> : vector<256x32xf32>
    %63 = tpu.matmul %59, %62, %cst_26 {dimension_numbers = #tpu.dot_dimension_numbers<[1], [0], [0], [1], [0, 0, 1, 1], [], []>} : vector<256x3xbf16>, vector<3x32xbf16>, vector<256x32xf32> -> vector<256x32xf32>
    %64 = arith.addf %56, %63 : vector<256x32xf32>
    %65 = vector.extract_strided_slice %1 {offsets = [2, 2, 0], sizes = [16, 16, 3], strides = [1, 1, 1]} : vector<18x18x3xf32> to vector<16x16x3xf32>
    %66 = vector.shape_cast %65 : vector<16x16x3xf32> to vector<256x3xf32>
    %67 = arith.truncf %66 : vector<256x3xf32> to vector<256x3xbf16>
    %c8 = arith.constant 8 : index
    %c0_27 = arith.constant 0 : index
    %c0_28 = arith.constant 0 : index
    %68 = vector.load %arg2[%c8, %c0_27, %c0_28] : memref<9x3x32xf32, #tpu.memory_space<vmem>>, vector<1x3x32xf32>
    %69 = vector.shape_cast %68 : vector<1x3x32xf32> to vector<3x32xf32>
    %70 = arith.truncf %69 : vector<3x32xf32> to vector<3x32xbf16>
    %cst_29 = arith.constant dense<0.000000e+00> : vector<256x32xf32>
    %71 = tpu.matmul %67, %70, %cst_29 {dimension_numbers = #tpu.dot_dimension_numbers<[1], [0], [0], [1], [0, 0, 1, 1], [], []>} : vector<256x3xbf16>, vector<3x32xbf16>, vector<256x32xf32> -> vector<256x32xf32>
    %72 = arith.addf %64, %71 : vector<256x32xf32>
    %c0_30 = arith.constant 0 : index
    %c0_31 = arith.constant 0 : index
    %73 = vector.load %arg3[%c0_30, %c0_31] : memref<1x32xf32, #tpu.memory_space<vmem>>, vector<1x32xf32>
    %74 = vector.broadcast %73 : vector<1x32xf32> to vector<256x32xf32>
    %75 = arith.addf %72, %74 : vector<256x32xf32>
    %cst_32 = arith.constant 0.000000e+00 : f32
    %76 = vector.broadcast %cst_32 : f32 to vector<256x32xf32>
    %77 = arith.maximumf %75, %76 : vector<256x32xf32>
    %cst_33 = arith.constant 3.906250e-03 : f32
    %78 = vector.broadcast %cst_33 : f32 to vector<1x256xf32>
    %cst_34 = arith.constant dense<0.000000e+00> : vector<1x32xf32>
    %79 = tpu.matmul %78, %77, %cst_34 {dimension_numbers = #tpu.dot_dimension_numbers<[1], [0], [0], [1], [0, 0, 1, 1], [], []>} : vector<1x256xf32>, vector<256x32xf32>, vector<1x32xf32> -> vector<1x32xf32>
    %c0_35 = arith.constant 0 : index
    %c0_36 = arith.constant 0 : index
    %80 = vector.load %arg4[%c0_35, %c0_36] : memref<32x128xf32, #tpu.memory_space<vmem>>, vector<32x128xf32>
    %cst_37 = arith.constant dense<0.000000e+00> : vector<1x128xf32>
    %81 = tpu.matmul %79, %80, %cst_37 {dimension_numbers = #tpu.dot_dimension_numbers<[1], [0], [0], [1], [0, 0, 1, 1], [], []>} : vector<1x32xf32>, vector<32x128xf32>, vector<1x128xf32> -> vector<1x128xf32>
    %c0_38 = arith.constant 0 : index
    %c0_39 = arith.constant 0 : index
    %82 = vector.load %arg5[%c0_38, %c0_39] : memref<1x128xf32, #tpu.memory_space<vmem>>, vector<1x128xf32>
    %83 = arith.addf %81, %82 : vector<1x128xf32>
    %c0_40 = arith.constant 0 : index
    %c0_41 = arith.constant 0 : index
    %c0_42 = arith.constant 0 : index
    %84 = vector.load %arg6[%c0_40, %c0_41, %c0_42] : memref<1x1x128xf32, #tpu.memory_space<vmem>>, vector<1x1x128xf32>
    %85 = vector.shape_cast %84 : vector<1x1x128xf32> to vector<1x128xf32>
    %86 = vector.shape_cast %83 : vector<1x128xf32> to vector<1x1x128xf32>
    tpu.vector_store %arg6[%c0_40, %c0_41, %c0_42], %86 {strides = array<i32>} : memref<1x1x128xf32, #tpu.memory_space<vmem>>, vector<1x1x128xf32>,
    return
  }
  func.func @transform_0(%arg0: i32) -> (i32, i32, i32, i32) {
    %c0_i32 = arith.constant 0 : i32
    %c0_i32_0 = arith.constant 0 : i32
    %c0_i32_1 = arith.constant 0 : i32
    %c0_i32_2 = arith.constant 0 : i32
    return %arg0, %c0_i32, %c0_i32_0, %c0_i32_1 : i32, i32, i32, i32
  }
  func.func @transform_1(%arg0: i32) -> (i32, i32, i32) {
    %c0_i32 = arith.constant 0 : i32
    %c0_i32_0 = arith.constant 0 : i32
    %c0_i32_1 = arith.constant 0 : i32
    %c0_i32_2 = arith.constant 0 : i32
    return %c0_i32, %c0_i32_0, %c0_i32_1 : i32, i32, i32
  }
  func.func @transform_2(%arg0: i32) -> (i32, i32) {
    %c0_i32 = arith.constant 0 : i32
    %c0_i32_0 = arith.constant 0 : i32
    %c0_i32_1 = arith.constant 0 : i32
    return %c0_i32, %c0_i32_0 : i32, i32
  }
  func.func @transform_3(%arg0: i32) -> (i32, i32) {
    %c0_i32 = arith.constant 0 : i32
    %c0_i32_0 = arith.constant 0 : i32
    %c0_i32_1 = arith.constant 0 : i32
    return %c0_i32, %c0_i32_0 : i32, i32
  }
  func.func @transform_4(%arg0: i32) -> (i32, i32) {
    %c0_i32 = arith.constant 0 : i32
    %c0_i32_0 = arith.constant 0 : i32
    %c0_i32_1 = arith.constant 0 : i32
    return %c0_i32, %c0_i32_0 : i32, i32
  }
  func.func @transform_5(%arg0: i32) -> (i32, i32, i32) {
    %c0_i32 = arith.constant 0 : i32
    %c0_i32_0 = arith.constant 0 : i32
    %c0_i32_1 = arith.constant 0 : i32
    return %arg0, %c0_i32, %c0_i32_0 : i32, i32, i32
  }
}

</mosaic_0001>

<bundles_post_ra>
// kernel: manual_model_forward.1
= control target key start
LH: loop header
LB: loop body
LE: loop exit
PB: predicated region body
PF: predicated region fallthrough
CT: control target
= control target key end

     0   :  { %10 = vsyncpa [#allocation3], 0  ;;  %s4998_s0 = inlined_call_operand.vmem [shape: f32[2,18,18,3], index: 0, kind: input, shape index: {}]   ;;  %s4999_s1 = inlined_call_operand.vmem [shape: f32[9,3,32], index: 1, kind: input, shape index: {}]   ;;  %s5000_s2 = inlined_call_operand.vmem [shape: f32[1,32], index: 2, kind: input, shape index: {}]   ;;  %s5001_s3 = inlined_call_operand.vmem [shape: f32[32,128], index: 3, kind: input, shape index: {}]   ;;  %s5002_s4 = inlined_call_operand.vmem [shape: f32[1,128], index: 4, kind: input, shape index: {}]   ;;  %s5003_s5 = inlined_call_operand.hbm [shape: f32[2,1,128], index: 5, kind: output, shape index: {}]  }
   0x1   :  { %12 = vsyncpa [#allocation3 + $0x1], 0  ;;  %s3932_s18 = smov 0   ;;  %s3934_s19 = smov 0  }
   0x2   :  { %s3936_s20 = smov 0   ;;  %s3938_s21 = smov 0  }
   0x3 LB: > { %s3953_s22 = sadd.s32 4294967295, %s3894_s21   ;;  %s2821_s23 = sadd.s32 4294967294, %s3894_s21   ;;  %s3894_s21 = sphi %s3938_s21, %s5072_s21   ;;  %s3890_s20 = sphi %s3936_s20, %s5071_s20   ;;  %s3886_s19 = sphi %s3934_s19, %s5070_s19   ;;  %s3882_s18 = sphi %s3932_s18, %s5069_s18  }
   0x4   : > { %s3957_s24 = sadd.s32 1, %s3894_s21   ;;  %s135_s25 = sadd.s32 1, %s3890_s20 }
   0x5   : > { %s132_s26 = ssub.s32 %s3894_s21, %s3957_s24  ;;  %p145_p0 = scmp.ne.s32.totalorder %s3890_s20, %s3886_s19 }
   0x6   : > { %p133_p1 = scmp.eq.s32.totalorder %s132_s26, 0  ;;  %p146_p2 = scmp.eq.s32.totalorder %s3953_s22, 1 }
   0x7   : > { %p151_p3 = scmp.ne.s32.totalorder %s3886_s19, %s3882_s18  ;;  %p152_p4 = scmp.eq.s32.totalorder %s2821_s23, 1 }
   0x8   : > { %s3968_s27 = scalar_select %p133_p1, %s3890_s20, %s135_s25  }
   0x9   : > { %p3970_p5 = por %p146_p2, %p145_p0  ;;  %p3974_p6 = por %p152_p4, %p151_p3 }
   0xa   : > { %p2824_p7 = scmp.ge.s32.totalorder %s3894_s21, 1  ;;  %p190_p8 = scmp.lt.s32.totalorder %s3894_s21, 3 }
   0xc   : > { %p191_p9 = pnand %p2824_p7, %p190_p8 }
   0xe   : > { %194 = sbr.rel (%p191_p9) target bundleno = 1025 (0x401), region = 40 }
  0x15   : > { %v2826_v0 = vld [vmem:[%s4999_s1 + $0x4] sm:$0x7]  ;;  %vm524_vm0 = vcmask 1040384   ;;  %vm525_vm1 = vcmask 1041408   ;;  %p217_p10 = scmp.lt.s32.totalorder %s3953_s22, 1  ;;  %v3896_v2 = vmov 65535  }
  0x16   : > { %v474_v1 = vpack.c.bf16 %v2826_v0, %v2826_v0  ;;  %v526_v3 = vsel %vm524_vm0, 4294967295, %v3896_v2  ;;  %v2893_v4 = vld [vmem:[%s4999_s1 + $0x10] sm:$0x7]  ;;  %v2910_v7 = vld [vmem:[%s4999_s1 + $0x14] sm:$0x7]  ;;  %vm343_vm2 = vcmask 1046528  }
  0x17   : > { %v3987_v5 = vsel %vm525_vm1, %v526_v3, 0  ;;  %v1496_v6 = vpack.c.bf16 %v2893_v4, %v2893_v4  ;;  %s218_s9 = scalar_select %p217_p10, %s3953_s22, 1  ;;  %v293_v8 = vld [vmem:[%s4999_s1] sm:$0x7]  ;;  %v1706_v10 = vpack.c.bf16 %v2910_v7, %v2910_v7  ;;  %v2927_v15 = vld [vmem:[%s4999_s1 + $0x18] sm:$0x7] }
  0x18   : > { %5027 = vst [vmem:[#allocation5_spill] sm:$0xff] %v3987_v5  ;;  %v529_v9 = vand.u32 %v3987_v5, %v474_v1  ;;  %v294_v11 = vpack.c.bf16 %v293_v8, %v293_v8  ;;  %vm475_vm3 = vcmask 23552   ;;  %v1909_v28 = vpack.c.bf16 %v2927_v15, %v2927_v15  ;;  %s215_s6 = sand.u32 1, %s3886_s19  }
  0x19   : > { %v1501_v12 = vand.u32 %v1496_v6, %v3987_v5  ;;  %s3787_s14 = smul.u32 432, %s218_s9  ;;  %v3999_v13 = vand.u32 %v1706_v10, %v3987_v5  ;;  %vm904_vm4 = vcmask 1045504   ;;  %vm3899_vm5 = vmmov 0   ;;  %s2980_s9 = sshll.u32 %s3953_s22, 4 }
  0x1a   : > { %3176 = vmatprep.subr.bf16.mxu1 %v529_v9  ;;  %v741_v14 = vand.u32 %v3987_v5, %v294_v11  ;;  %v4087_v54 = vand.u32 %v1909_v28, %v3987_v5  ;;  %vm2678_vm6 = vcmask 261120   ;;  %s216_s10 = scalar_lea.vmem [#allocation2], %s215_s6  ;;  %s2754_s15 = scalar_lea.sflag [#allocation3], %s215_s6 }
  0x1b   : > { %3312 = vmatprep.subr.bf16.mxu0 %v1501_v12  ;;  %3177 = vmatpush3.bf16.msra.mxu1 %v529_v9  ;;  %s4005_s17 = scalar_lea.vmem %s4998_s0, %s3787_s14  ;;  %s2766_s11 = sshll.u32 %s216_s10, 4  ;;  %s4958_s11 = int_to_ptr.vmem [resolvable:$true] %s2766_s11 }
  0x1c   : > { %3313 = vmatpush3.bf16.msra.mxu0 %v1501_v12  ;;  %v4011_v16 = vld [vmem:[%s4005_s17] sm:$0xff]  ;;  %v4014_v17 = vld [vmem:[%s4005_s17 + $0x8] sm:$0xff]  ;;  %v4017_v18 = vld [vmem:[%s4005_s17 + $0x10] sm:$0x3]  ;;  %3210 = vmatprep.subr.bf16.mxu1 %v741_v14  ;;  %5035 = vst [vmem:[#allocation13_spill] sm:$0xff] %v4087_v54  ;;  %s4956_s14 = scalar_lea.hbm %s5003_s5, %s2980_s9  ;;  %s3832_s16 = scalar_lea.vmem %s4958_s11, 16 }
  0x1d   : > { %5028 = vst [vmem:[#allocation6_spill] sm:$0xff] %v4011_v16  ;;  %5029 = vst [vmem:[#allocation7_spill] sm:$0xff] %v4017_v18  ;;  %v344_v19 = vrot.slane %v4011_v16, 1  ;;  %v345_v20 = vrot.slane %v4014_v17, 1  ;;  %v347_v21 = vrot.slane %v4017_v18, 1  ;;  %v4023_v22 = vld [vmem:[%s4005_s17 + $0x18] sm:$0xff]  ;;  %3346 = vmatprep.subr.bf16.mxu0 %v3999_v13  ;;  %p3833_p11 = scmp.ne.s32.totalorder %s4958_s11, %s3832_s16 }
  0x1e   : > { %5030 = vst [vmem:[#allocation8_spill] sm:$0xff] %v4023_v22  ;;  %v4026_v23 = vld [vmem:[%s4005_s17 + $0x20] sm:$0xff]  ;;  %v4030_v24 = vld [vmem:[%s4005_s17 + $0x28] sm:$0x3]  ;;  %v349_v26 = vrot.slane %v4023_v22, 1  ;;  %v4038_v27 = vld [vmem:[%s4005_s17 + $0x30] sm:$0xff] }
  0x1f   : > { %5031 = vst [vmem:[#allocation9_spill] sm:$0xff] %v4026_v23  ;;  %5032 = vst [vmem:[#allocation10_spill] sm:$0xff] %v4030_v24  ;;  %v4034_v25 = vpack.c.bf16 %v4026_v23, %v4023_v22  ;;  %v346_v29 = vsel %vm343_vm2, %v344_v19, %v345_v20  ;;  %v348_v30 = vsel %vm343_vm2, %v345_v20, %v347_v21  ;;  %v350_v31 = vrot.slane %v4026_v23, 1  ;;  %v4045_v33 = vld [vmem:[%s4005_s17 + $0x38] sm:$0xff]  ;;  %v4048_v34 = vld [vmem:[%s4005_s17 + $0x40] sm:$0x3]  ;;  %p3834_p12 = pnand %p3833_p11, %p3970_p5 }
  0x20   : > { %v352_v32 = vrot.slane %v4030_v24, 1  ;;  %v456_v35 = vpack.c.bf16 %v348_v30, %v346_v29  ;;  %v4051_v36 = vld [vmem:[%s4005_s17 + $0x48] sm:$0xff]  ;;  %v4054_v37 = vld [vmem:[%s4005_s17 + $0x50] sm:$0xff]  ;;  %v354_v40 = vrot.slane %v4038_v27, 1  ;;  %v355_v41 = vrot.slane %v4045_v33, 1  ;;  %v4064_v43 = vld [vmem:[%s4005_s17 + $0x60] sm:$0xff] }
  0x21   : > { %5033 = vst [vmem:[#allocation11_spill] sm:$0xff] %v4034_v25  ;;  %v351_v38 = vsel %vm343_vm2, %v349_v26, %v350_v31  ;;  %v4061_v42 = vld [vmem:[%s4005_s17 + $0x58] sm:$0x3]  ;;  %v4067_v44 = vld [vmem:[%s4005_s17 + $0x68] sm:$0xff]  ;;  %v357_v46 = vrot.slane %v4048_v34, 1  ;;  %v359_v50 = vrot.slane %v4051_v36, 1  ;;  %p3835_p13 = pneg %p3834_p12 }
  0x22   : > { %v353_v39 = vsel %vm343_vm2, %v350_v31, %v352_v32  ;;  %5034 = vst [vmem:[#allocation12_spill] sm:$0xff] %v4061_v42  ;;  %3178 = vmatprep.mubr.msk.bf16.mxu1 %vm475_vm3, %v456_v35  ;;  %v4072_v47 = vld [vmem:[%s4005_s17 + $0x70] sm:$0x3]  ;;  %v4075_v48 = vld [vmem:[%s4005_s17 + $0x78] sm:$0xff]  ;;  %v356_v49 = vsel %vm343_vm2, %v354_v40, %v355_v41  ;;  %v360_v51 = vrot.slane %v4054_v37, 1  ;;  %v4081_v52 = vld [vmem:[%s4005_s17 + $0x80] sm:$0xff] }
  0x23   : > { %v457_v45 = vpack.c.bf16 %v353_v39, %v351_v38  ;;  %v4084_v53 = vld [vmem:[%s4005_s17 + $0x88] sm:$0x3]  ;;  %v358_v55 = vsel %vm343_vm2, %v355_v41, %v357_v46  ;;  %v362_v56 = vrot.slane %v4061_v42, 1  ;;  %v364_v57 = vrot.slane %v4064_v43, 1  ;;  %v4104_v2 = vld [vmem:[%s4005_s17 + $0x90] sm:$0xff]  ;;  %v4107_v3 = vld [vmem:[%s4005_s17 + $0x98] sm:$0xff] }
  0x24   : > { %v365_v58 = vrot.slane %v4067_v44, 1  ;;  %v4095_v59 = vpack.c.bf16 %v358_v55, %v356_v49  ;;  %v361_v60 = vsel %vm343_vm2, %v359_v50, %v360_v51  ;;  %v367_v61 = vrot.slane %v4072_v47, 1  ;;  %v4116_v6 = vld [vmem:[%s4005_s17 + $0xa0] sm:$0x3]  ;;  %v4119_v7 = vld [vmem:[%s4005_s17 + $0xa8] sm:$0xff]  ;;  %v4122_v8 = vld [vmem:[%s4005_s17 + $0xb0] sm:$0xff] }
  0x25   : > { %3314 = vmatprep.mubr.msk.bf16.mxu0 %vm475_vm3, %v457_v45  ;;  %3179 = vmatmul.mubr.msk.bf16.vlgmr.msra.gmra.mrb[0].mxu1 %vm475_vm3, %v457_v45  ;;  %v369_v62 = vrot.slane %v4075_v48, 1  ;;  %v363_v63 = vsel %vm343_vm2, %v360_v51, %v362_v56  ;;  %v370_v0 = vrot.slane %v4081_v52, 1  ;;  %v372_v1 = vrot.slane %v4084_v53, 1  ;;  %v4127_v11 = vld [vmem:[%s4005_s17 + $0xb8] sm:$0x3]  ;;  %v4137_v20 = vld [vmem:[%s4005_s17 + $0xc0] sm:$0xff] }
  0x26   : > { %5036 = vst [vmem:[#allocation14_spill] sm:$0xff] %v4095_v59  ;;  %3211 = vmatpush3.bf16.msra.mxu1 %v741_v14  ;;  %3315 = vmatmul.mubr.msk.bf16.vlgmr.msra.gmra.mrb[0].mxu0 %vm475_vm3, %v4095_v59  ;;  %v4113_v4 = vpack.c.bf16 %v363_v63, %v361_v60  ;;  %v366_v9 = vsel %vm343_vm2, %v364_v57, %v365_v58  ;;  %v374_v15 = vrot.slane %v4104_v2, 1  ;;  %v375_v19 = vrot.slane %v4107_v3, 1  ;;  %v4140_v21 = vld [vmem:[%s4005_s17 + $0xc8] sm:$0xff]  ;;  %v4147_v29 = vld [vmem:[%s4005_s17 + $0xd0] sm:$0x3] }
  0x27   : > { %3182 = vmatprep.mubr.msk.bf16.mxu1 %vm475_vm3, %v4095_v59  ;;  %v368_v10 = vsel %vm343_vm2, %v365_v58, %v367_v61  ;;  %3347 = vmatpush3.bf16.msra.mxu0 %v3999_v13  ;;  %v371_v12 = vsel %vm343_vm2, %v369_v62, %v370_v0  ;;  %v373_v14 = vsel %vm343_vm2, %v370_v0, %v372_v1  ;;  %v377_v13 = vrot.slane %v4116_v6, 1  ;;  %v4150_v30 = vld [vmem:[%s4005_s17 + $0xd8] sm:$0xff]  ;;  %v4157_v38 = vld [vmem:[%s4005_s17 + $0xe0] sm:$0xff]  ;;  %v4160_v39 = vld [vmem:[%s4005_s17 + $0xe8] sm:$0x3]  ;;  %s3901_s22 = smov [#allocation2]  }
  0x28   : > { %5037 = vst [vmem:[#allocation15_spill] sm:$0xff] %v4113_v4  ;;  %3318 = vmatprep.mubr.msk.bf16.mxu0 %vm475_vm3, %v4113_v4  ;;  %3380 = vmatprep.subr.bf16.mxu0 %v4087_v54  ;;  %v379_v26 = vrot.slane %v4119_v7, 1  ;;  %v380_v28 = vrot.slane %v4122_v8, 1  ;;  %v4153_v32 = vpack.c.bf16 %v368_v10, %v366_v9  ;;  %v382_v35 = vrot.slane %v4127_v11, 1  ;;  %v4163_v40 = vld [vmem:[%s4005_s17 + $0xf0] sm:$0xff]  ;;  %v4172_v49 = vld [vmem:[%s4005_s17 + $0xf8] sm:$0xff] }
  0x29   : > { %v4169_v46 = vpack.c.bf16 %v373_v14, %v371_v12  ;;  %v4175_v50 = vld [vmem:[%s4005_s17 + $0x100] sm:$0x3]  ;;  %v4178_v51 = vld [vmem:[%s4005_s17 + $0x108] sm:$0xff]  ;;  %v376_v55 = vsel %vm343_vm2, %v374_v15, %v375_v19  ;;  %v384_v56 = vrot.slane %v4137_v20, 1  ;;  %v385_v57 = vrot.slane %v4140_v21, 1  ;;  %v4186_v58 = vld [vmem:[%s4005_s17 + $0x110] sm:$0xff] }
  0x2a   : > { %5038 = vst [vmem:[#allocation16_spill] sm:$0xff] %v4153_v32  ;;  %v4189_v60 = vld [vmem:[%s4005_s17 + $0x118] sm:$0x3]  ;;  %v4192_v61 = vld [vmem:[%s4005_s17 + $0x120] sm:$0xff]  ;;  %v378_v62 = vsel %vm343_vm2, %v375_v19, %v377_v13  ;;  %v381_v63 = vsel %vm343_vm2, %v379_v26, %v380_v28  ;;  %v387_v0 = vrot.slane %v4147_v29, 1  ;;  %v389_v1 = vrot.slane %v4150_v30, 1 }
  0x2b   : > { %5039 = vst [vmem:[#allocation17_spill] sm:$0xff] %v4169_v46  ;;  %5040 = vst [vmem:[#allocation18_spill] sm:$0xff] %v4192_v61  ;;  %v4199_v9 = vld [vmem:[%s4005_s17 + $0x128] sm:$0xff]  ;;  %v4202_v10 = vld [vmem:[%s4005_s17 + $0x130] sm:$0x3]  ;;  %v383_v14 = vsel %vm343_vm2, %v380_v28, %v382_v35  ;;  %v390_v15 = vrot.slane %v4157_v38, 1  ;;  %v4233_v22 = vpack.c.bf16 %v378_v62, %v376_v55  ;;  %v386_v16 = vsel %vm343_vm2, %v384_v56, %v385_v57 }
  0x2c   : > { %5041 = vst [vmem:[#allocation19_spill] sm:$0xff] %v4199_v9  ;;  %5042 = vst [vmem:[#allocation20_spill] sm:$0xff] %v4202_v10  ;;  %v4205_v12 = vld [vmem:[%s4005_s17 + $0x138] sm:$0xff]  ;;  %v392_v19 = vrot.slane %v4160_v39, 1  ;;  %v394_v13 = vrot.slane %v4163_v40, 1  ;;  %v4214_v26 = vld [vmem:[%s4005_s17 + $0x140] sm:$0xff]  ;;  %v4235_v5 = vpack.c.bf16 %v383_v14, %v381_v63 }
  0x2d   : > { %3183 = vmatmul.mubr.msk.bf16.gmra.mrb[4].mxu1 %vm475_vm3, %v4113_v4  ;;  %v4217_v31 = vld [vmem:[%s4005_s17 + $0x148] sm:$0x3]  ;;  %v395_v41 = vrot.slane %v4172_v49, 1  ;;  %v397_v45 = vrot.slane %v4175_v50, 1  ;;  %v399_v28 = vrot.slane %v4178_v51, 1  ;;  %v400_v35 = vrot.slane %v4186_v58, 1 }
  0x2e   : > { %3186 = vmatprep.mubr.msk.bf16.mxu1 %vm475_vm3, %v4153_v32  ;;  %3319 = vmatmul.mubr.msk.bf16.gmra.mrb[4].mxu0 %vm475_vm3, %v4153_v32  ;;  %v402_v32 = vrot.slane %v4189_v60, 1  ;;  %v404_v4 = vrot.slane %v4192_v61, 1  ;;  %v405_v59 = vrot.slane %v4199_v9, 1  ;;  %v407_v54 = vrot.slane %v4202_v10, 1  ;;  %5043 = vst [vmem:[#allocation21_spill] sm:$0xff] %v4233_v22  ;;  %v4240_v9 = vld [vmem:[%s4005_s17 + $0x150] sm:$0xff] }
  0x2f   : > { %3322 = vmatprep.mubr.msk.bf16.mxu0 %vm475_vm3, %v4169_v46  ;;  %v918_v25 = vrot.slane %v4048_v34, 2  ;;  %v409_v42 = vrot.slane %v4205_v12, 1  ;;  %v410_v24 = vrot.slane %v4214_v26, 1  ;;  %v412_v23 = vrot.slane %v4217_v31, 1  ;;  %v4243_v10 = vld [vmem:[%s4005_s17 + $0x158] sm:$0xff] }
  0x30   : > { %v388_v61 = vsel %vm343_vm2, %v385_v57, %v387_v0  ;;  %v391_v34 = vsel %vm343_vm2, %v389_v1, %v390_v15  ;;  %v393_v55 = vsel %vm343_vm2, %v390_v15, %v392_v19  ;;  %v396_v62 = vsel %vm343_vm2, %v394_v13, %v395_v41  ;;  %v4252_v56 = vld [vmem:[%s4005_s17 + $0x160] sm:$0x3]  ;;  %v4265_v13 = vld [vmem:[%s4005_s17 + $0x168] sm:$0xff] }
  0x31   : > { %v398_v63 = vsel %vm343_vm2, %v395_v41, %v397_v45  ;;  %v401_v57 = vsel %vm343_vm2, %v399_v28, %v400_v35  ;;  %v403_v0 = vsel %vm343_vm2, %v400_v35, %v402_v32  ;;  %v406_v14 = vsel %vm343_vm2, %v404_v4, %v405_v59  ;;  %v4291_v32 = vld [vmem:[%s4005_s17 + $0x180] sm:$0xff] }
  0x32   : > { %v408_v1 = vsel %vm343_vm2, %v405_v59, %v407_v54  ;;  %v411_v15 = vsel %vm343_vm2, %v409_v42, %v410_v24  ;;  %v413_v19 = vsel %vm343_vm2, %v410_v24, %v412_v23  ;;  %v414_v41 = vrot.slane %v4240_v9, 1  ;;  %v4278_v24 = vld [vmem:[%s4005_s17 + $0x178] sm:$0x3] }
  0x33   : > { %v415_v45 = vrot.slane %v4243_v10, 1  ;;  %v4274_v42 = vpack.c.bf16 %v388_v61, %v386_v16  ;;  %v417_v23 = vrot.slane %v4252_v56, 1  ;;  %v4282_v54 = vpack.c.bf16 %v393_v55, %v391_v34 }
  0x34   : > { %v4284_v59 = vpack.c.bf16 %v398_v63, %v396_v62  ;;  %v4286_v4 = vpack.c.bf16 %v403_v0, %v401_v57  ;;  %v4288_v35 = vpack.c.bf16 %v408_v1, %v406_v14  ;;  %v4293_v28 = vpack.c.bf16 %v413_v19, %v411_v15  ;;  %v4307_v63 = vld [vmem:[%s4005_s17 + $0x188] sm:$0xff] }
  0x35   : > { %3187 = vmatmul.mubr.msk.bf16.gmra.mrb[8].mxu1 %vm475_vm3, %v4169_v46  ;;  %v4268_v46 = vld [vmem:[%s4005_s17 + $0x170] sm:$0xff]  ;;  %v419_v16 = vrot.slane %v4265_v13, 1  ;;  %v5045_v18 = vrot.slane %v4038_v27, 2  ;;  %v4303_v55 = vsel %vm343_vm2, %v414_v41, %v415_v45  ;;  %v422_v62 = vrot.slane %v4278_v24, 1 }
  0x36   : > { %3190 = vmatprep.mubr.msk.bf16.mxu1 %vm475_vm3, %v4233_v22  ;;  %3323 = vmatmul.mubr.msk.bf16.gmra.mrb[8].mxu0 %vm475_vm3, %v4233_v22  ;;  %v420_v61 = vrot.slane %v4268_v46, 1  ;;  %v5044_v22 = vrot.slane %v4045_v33, 2  ;;  %v4314_v14 = vpack.c.bf16 %v4045_v33, %v4038_v27  ;;  %v4317_v1 = vsel %vm343_vm2, %v415_v45, %v417_v23 }
  0x37   : > { %3326 = vmatprep.mubr.msk.bf16.mxu0 %vm475_vm3, %v4235_v5  ;;  %v4324_v15 = vpack.c.bf16 %v4054_v37, %v4051_v36  ;;  %v926_v19 = vrot.slane %v4067_v44, 2  ;;  %v928_v27 = vrot.slane %v4072_v47, 2  ;;  %v4333_v33 = vpack.c.bf16 %v4067_v44, %v4064_v43 }
  0x38   : > { %v917_v34 = vsel %vm904_vm4, %v5045_v18, %v5044_v22  ;;  %v5046_v57 = vmov %v5044_v22  ;;  %v4338_v41 = vsel %vm343_vm2, %v419_v16, %v420_v61  ;;  %v1487_v45 = vrot.slane %v4307_v63, 1 }
  0x39   : > { %v919_v0 = vsel %vm904_vm4, %v5046_v57, %v918_v25  ;;  %v925_v25 = vrot.slane %v4064_v43, 2  ;;  %v930_v23 = vrot.slane %v4075_v48, 2  ;;  %v4344_v57 = vsel %vm343_vm2, %v420_v61, %v422_v62 }
  0x3a   : > { %v4320_v22 = vpack.c.bf16 %v919_v0, %v917_v34  ;;  %v931_v34 = vrot.slane %v4081_v52, 2  ;;  %v929_v43 = vsel %vm904_vm4, %v926_v19, %v928_v27  ;;  %v933_v44 = vrot.slane %v4084_v53, 2 }
  0x3b   : > { %v927_v47 = vsel %vm904_vm4, %v925_v25, %v926_v19  ;;  %v4356_v18 = vpack.c.bf16 %v4081_v52, %v4075_v48  ;;  %v935_v61 = vrot.slane %v4104_v2, 2  ;;  %v936_v53 = vrot.slane %v4107_v3, 2 }
  0x3c   : > { %v4351_v16 = vpack.c.bf16 %v929_v43, %v927_v47  ;;  %v932_v0 = vsel %vm904_vm4, %v930_v23, %v931_v34  ;;  %v934_v62 = vsel %vm904_vm4, %v931_v34, %v933_v44  ;;  %v938_v25 = vrot.slane %v4116_v6, 2 }
  0x3d   : > { %3191 = vmatmul.mubr.msk.bf16.gmra.mrb[12].mxu1 %vm475_vm3, %v4235_v5  ;;  %v4366_v19 = vpack.c.bf16 %v4107_v3, %v4104_v2  ;;  %v4368_v27 = vpack.c.bf16 %v934_v62, %v932_v0  ;;  %v940_v48 = vrot.slane %v4119_v7, 2  ;;  %v941_v52 = vrot.slane %v4122_v8, 2 }
  0x3e   : > { %3194 = vmatprep.mubr.msk.bf16.mxu1 %vm475_vm3, %v4274_v42  ;;  %3327 = vmatmul.mubr.msk.bf16.gmra.mrb[12].mxu0 %vm475_vm3, %v4274_v42  ;;  %v943_v23 = vrot.slane %v4127_v11, 2  ;;  %v937_v47 = vsel %vm904_vm4, %v935_v61, %v936_v53  ;;  %v939_v34 = vsel %vm904_vm4, %v936_v53, %v938_v25  ;;  %v4377_v43 = vpack.c.bf16 %v4122_v8, %v4119_v7 }
  0x3f   : > { %3330 = vmatprep.mubr.msk.bf16.mxu0 %vm475_vm3, %v4282_v54  ;;  %v945_v6 = vrot.slane %v4137_v20, 2  ;;  %v4380_v2 = vpack.c.bf16 %v939_v34, %v937_v47  ;;  %v942_v3 = vsel %vm904_vm4, %v940_v48, %v941_v52  ;;  %v946_v0 = vrot.slane %v4140_v21, 2 }
  0x40   : > { %v944_v44 = vsel %vm904_vm4, %v941_v52, %v943_v23  ;;  %v948_v61 = vrot.slane %v4147_v29, 2  ;;  %v4392_v7 = vpack.c.bf16 %v4140_v21, %v4137_v20  ;;  %v950_v8 = vrot.slane %v4150_v30, 2 }
  0x41   : > { %v4387_v11 = vpack.c.bf16 %v944_v44, %v942_v3  ;;  %v947_v62 = vsel %vm904_vm4, %v945_v6, %v946_v0  ;;  %v951_v53 = vrot.slane %v4157_v38, 2  ;;  %v953_v25 = vrot.slane %v4160_v39, 2 }
  0x42   : > { %v4402_v48 = vpack.c.bf16 %v4157_v38, %v4150_v30  ;;  %v949_v29 = vsel %vm904_vm4, %v946_v0, %v948_v61  ;;  %v955_v20 = vrot.slane %v4163_v40, 2  ;;  %v956_v21 = vrot.slane %v4172_v49, 2 }
  0x43   : > { %v958_v52 = vrot.slane %v4175_v50, 2  ;;  %v4410_v23 = vpack.c.bf16 %v949_v29, %v947_v62  ;;  %v952_v47 = vsel %vm904_vm4, %v950_v8, %v951_v53  ;;  %v954_v39 = vsel %vm904_vm4, %v951_v53, %v953_v25  ;;  %v5048_v8 = vld [vmem:[#allocation19_spill] sm:$0xff]  ;;  %v5049_v53 = vld [vmem:[#allocation20_spill] sm:$0xff] }
  0x44   : > { %v4416_v30 = vpack.c.bf16 %v4172_v49, %v4163_v40  ;;  %v4420_v38 = vpack.c.bf16 %v954_v39, %v952_v47  ;;  %v957_v50 = vsel %vm904_vm4, %v955_v20, %v956_v21  ;;  %v960_v6 = vrot.slane %v4178_v51, 2  ;;  %v5047_v49 = vld [vmem:[#allocation18_spill] sm:$0xff] }
  0x45   : > { %3195 = vmatmul.mubr.msk.bf16.gmra.mrb[16].mxu1 %vm475_vm3, %v4282_v54  ;;  %v959_v34 = vsel %vm904_vm4, %v956_v21, %v958_v52  ;;  %v961_v44 = vrot.slane %v4186_v58, 2  ;;  %v963_v0 = vrot.slane %v4189_v60, 2  ;;  %v4431_v40 = vpack.c.bf16 %v4186_v58, %v4178_v51 }
  0x46   : > { %3198 = vmatprep.mubr.msk.bf16.mxu1 %vm475_vm3, %v4284_v59  ;;  %3331 = vmatmul.mubr.msk.bf16.gmra.mrb[16].mxu0 %vm475_vm3, %v4284_v59  ;;  %v4425_v3 = vpack.c.bf16 %v959_v34, %v957_v50  ;;  %v965_v61 = vrot.slane %v5047_v49, 2  ;;  %v966_v62 = vrot.slane %v5048_v8, 2  ;;  %v968_v25 = vrot.slane %v5049_v53, 2  ;;  %v2859_v53 = vld [vmem:[%s4999_s1 + $0x8] sm:$0x7] }
  0x47   : > { %3334 = vmatprep.mubr.msk.bf16.mxu0 %vm475_vm3, %v4286_v4  ;;  %v4438_v29 = vpack.c.bf16 %v5048_v8, %v5047_v49  ;;  %v962_v20 = vsel %vm904_vm4, %v960_v6, %v961_v44  ;;  %v964_v21 = vsel %vm904_vm4, %v961_v44, %v963_v0  ;;  %v970_v60 = vrot.slane %v4205_v12, 2 }
  0x48   : > { %v971_v52 = vrot.slane %v4214_v26, 2  ;;  %v4446_v51 = vpack.c.bf16 %v964_v21, %v962_v20  ;;  %v967_v58 = vsel %vm904_vm4, %v965_v61, %v966_v62  ;;  %v969_v47 = vsel %vm904_vm4, %v966_v62, %v968_v25 }
  0x49   : > { %v973_v39 = vrot.slane %v4217_v31, 2  ;;  %v4453_v50 = vpack.c.bf16 %v969_v47, %v967_v58  ;;  %v4458_v6 = vpack.c.bf16 %v4214_v26, %v4205_v12  ;;  %v975_v44 = vrot.slane %v4240_v9, 2 }
  0x4a   : > { %v972_v34 = vsel %vm904_vm4, %v970_v60, %v971_v52  ;;  %v976_v49 = vrot.slane %v4243_v10, 2  ;;  %v978_v31 = vrot.slane %v4252_v56, 2  ;;  %v4466_v61 = vpack.c.bf16 %v4243_v10, %v4240_v9  ;;  %v273_v9 = vld [vmem:[%s4005_s17 + $0x190] sm:$0x3] }
  0x4b   : > { %v974_v0 = vsel %vm904_vm4, %v971_v52, %v973_v39  ;;  %v980_v12 = vrot.slane %v4265_v13, 2  ;;  %v981_v26 = vrot.slane %v4268_v46, 2  ;;  %v983_v62 = vrot.slane %v4278_v24, 2 }
  0x4c   : > { %v4470_v8 = vpack.c.bf16 %v974_v0, %v972_v34  ;;  %v977_v10 = vsel %vm904_vm4, %v975_v44, %v976_v49  ;;  %v979_v56 = vsel %vm904_vm4, %v976_v49, %v978_v31  ;;  %v4485_v25 = vpack.c.bf16 %v4268_v46, %v4265_v13  ;;  %v5051_v44 = vld [vmem:[#allocation6_spill] sm:$0xff] }
  0x4d   : > { %3199 = vmatmul.mubr.msk.bf16.gmra.mrb[20].mxu1 %vm475_vm3, %v4286_v4  ;;  %v1696_v20 = vrot.slane %v4291_v32, 2  ;;  %v4488_v21 = vpack.c.bf16 %v979_v56, %v977_v10  ;;  %v982_v24 = vsel %vm904_vm4, %v980_v12, %v981_v26  ;;  %v984_v60 = vsel %vm904_vm4, %v981_v26, %v983_v62  ;;  %v5053_v12 = vld [vmem:[#allocation7_spill] sm:$0xff] }
  0x4e   : > { %3202 = vmatprep.mubr.msk.bf16.mxu1 %vm475_vm3, %v4288_v35  ;;  %3335 = vmatmul.mubr.msk.bf16.gmra.mrb[20].mxu0 %vm475_vm3, %v4288_v35  ;;  %v1697_v52 = vrot.slane %v4307_v63, 2  ;;  %v4493_v58 = vpack.c.bf16 %v984_v60, %v982_v24  ;;  %v1699_v47 = vrot.slane %v273_v9, 2  ;;  %v1035_v39 = vpack.c.bf16 %v2859_v53, %v2859_v53  ;;  %v5058_v60 = vld [vmem:[#allocation9_spill] sm:$0xff] }
  0x4f   : > { %3338 = vmatprep.mubr.msk.bf16.mxu0 %vm475_vm3, %v4293_v28  ;;  %v5050_v34 = vrot.slane %v4014_v17, 2  ;;  %v5052_v0 = vrot.slane %v5051_v44, 2  ;;  %v4504_v13 = vpack.c.bf16 %v4317_v1, %v4303_v55  ;;  %v1489_v49 = vrot.slane %v273_v9, 1  ;;  %v5056_v1 = vld [vmem:[#allocation5_spill] sm:$0xff] }
  0x50   : > { %v1698_v31 = vsel %vm904_vm4, %v1696_v20, %v1697_v52  ;;  %v5054_v26 = vrot.slane %v5053_v12, 2  ;;  %v4518_v10 = vpack.c.bf16 %v4344_v57, %v4338_v41  ;;  %v1700_v55 = vsel %vm904_vm4, %v1697_v52, %v1699_v47  ;;  %v5057_v20 = vld [vmem:[#allocation8_spill] sm:$0xff] }
  0x51   : > { %v4500_v46 = vsel %vm904_vm4, %v5052_v0, %v5050_v34  ;;  %v5055_v62 = vmov %v5050_v34  ;;  %v1085_v9 = vand.u32 %v1035_v39, %v5056_v1  ;;  %v910_v24 = vrot.slane %v5057_v20, 2  ;;  %v5059_v0 = vld [vmem:[#allocation10_spill] sm:$0xff] }
  0x52   : > { %v4512_v53 = vsel %vm904_vm4, %v5055_v62, %v5054_v26  ;;  %v911_v34 = vrot.slane %v5058_v60, 2  ;;  %v913_v12 = vrot.slane %v5059_v0, 2  ;;  %v4529_v26 = vpack.c.bf16 %v1700_v55, %v1698_v31  ;;  %v5062_v0 = vld [vmem:[#allocation11_spill] sm:$0xff] }
  0x53   : > { %v1017_v56 = vpack.c.bf16 %v4512_v53, %v4500_v46  ;;  %3244 = vmatprep.subr.bf16.mxu1 %v1085_v9  ;;  %v4535_v41 = vpack.c.bf16 %v4307_v63, %v4291_v32  ;;  %v5060_v57 = vrot.slane %v4291_v32, 1  ;;  %v1490_v47 = vsel %vm343_vm2, %v1487_v45, %v1489_v49  ;;  %v274_v53 = vld [vmem:[%s4005_s17 + $0x198] sm:$0xff] }
  0x54   : > { %v277_v39 = vpack.c.bf16 %v4014_v17, %v5051_v44  ;;  %v912_v31 = vsel %vm904_vm4, %v910_v24, %v911_v34  ;;  %v914_v62 = vsel %vm904_vm4, %v911_v34, %v913_v12  ;;  %v920_v32 = vrot.slane %v4051_v36, 2  ;;  %v2944_v17 = vld [vmem:[%s4999_s1 + $0x1c] sm:$0x7]  ;;  %v2876_v44 = vld [vmem:[%s4999_s1 + $0xc] sm:$0x7] }
  0x55   : > { %3203 = vmatmul.mubr.msk.bf16.gmra.mrb[24].mxu1 %vm475_vm3, %v4293_v28  ;;  %v1488_v52 = vsel %vm343_vm2, %v5060_v57, %v1487_v45  ;;  %v1018_v20 = vpack.c.bf16 %v914_v62, %v912_v31  ;;  %v921_v63 = vrot.slane %v4054_v37, 2  ;;  %v5061_v45 = vld [vmem:[#allocation12_spill] sm:$0xff]  ;;  %v1283_v24 = vpack.c.bf16 %v2876_v44, %v2876_v44  ;;  %v276_v31 = vld [vmem:[%s4005_s17 + $0x1a8] sm:$0x3] }
  0x56   : > { %3206 = vmatprep.mubr.msk.bf16.mxu1 %vm475_vm3, %v4504_v13  ;;  %3339 = vmatmul.mubr.msk.bf16.gmra.mrb[24].mxu0 %vm475_vm3, %v4504_v13  ;;  %v4551_v55 = vpack.c.bf16 %v1490_v47, %v1488_v52  ;;  %v923_v49 = vrot.slane %v5061_v45, 2  ;;  %v2122_v60 = vpack.c.bf16 %v2944_v17, %v2944_v17  ;;  %v5063_v52 = vld [vmem:[#allocation13_spill] sm:$0xff]  ;;  %v5065_v17 = vld [vmem:[#allocation15_spill] sm:$0xff]  ;;  %v5066_v44 = vld [vmem:[#allocation16_spill] sm:$0xff] }
  0x57   : > { %3342 = vmatprep.mubr.msk.bf16.mxu0 %vm475_vm3, %v4518_v10  ;;  %v922_v36 = vsel %vm904_vm4, %v920_v32, %v921_v63  ;;  %v1288_v34 = vand.u32 %v1283_v24, %v5056_v1  ;;  %v5067_v24 = vld [vmem:[#allocation17_spill] sm:$0xff] }
  0x58   : > { %v924_v37 = vsel %vm904_vm4, %v921_v63, %v923_v49  ;;  %v2127_v57 = vand.u32 %v2122_v60, %v5056_v1  ;;  %v5064_v49 = vld [vmem:[#allocation14_spill] sm:$0xff]  ;;  %v4854_v60 = vld [vmem:[%s5000_s2] ss:$0 sm:$0xff] }
  0x59   : > { %v4573_v12 = vpack.c.bf16 %v924_v37, %v922_v36 }
  0x5d   : > { %3207 = vmatmul.mubr.msk.bf16.gmra.mrb[28].mxu1 %vm475_vm3, %v4518_v10 }
  0x5e   : > { %3212 = vmatprep.mubr.msk.bf16.mxu1 %vm475_vm3, %v277_v39  ;;  %3343 = vmatmul.mubr.msk.bf16.gmra.mrb[28].mxu0 %vm475_vm3, %v4551_v55 }
  0x5f   : > { %3348 = vmatprep.mubr.msk.bf16.mxu0 %vm475_vm3, %v1018_v20 }
  0x65   : > { %3213 = vmatmul.mubr.msk.bf16.vlgmr.msra.gmra.mrb[0].mxu1 %vm475_vm3, %v5062_v0 }
  0x66   : > { %3216 = vmatprep.mubr.msk.bf16.mxu1 %vm475_vm3, %v4314_v14  ;;  %3245 = vmatpush3.bf16.msra.mxu1 %v1085_v9  ;;  %v2961_v9 = vld [vmem:[%s4999_s1 + $0x20] sm:$0x7] }
  0x67   : > { %3278 = vmatprep.subr.bf16.mxu1 %v1288_v34  ;;  %3349 = vmatmul.mubr.msk.bf16.vlgmr.msra.gmra.mrb[0].mxu0 %vm475_vm3, %v4320_v22  ;;  %v2332_v47 = vpack.c.bf16 %v2961_v9, %v2961_v9 }
  0x68   : > { %3352 = vmatprep.mubr.msk.bf16.mxu0 %vm475_vm3, %v4573_v12  ;;  %3381 = vmatpush3.bf16.msra.mxu0 %v5063_v52 }
  0x69   : > { %3414 = vmatprep.subr.bf16.mxu0 %v2127_v57  ;;  %v2337_v46 = vand.u32 %v2332_v47, %v5056_v1  ;;  %v275_v1 = vld [vmem:[%s4005_s17 + $0x1a0] sm:$0xff]  ;;  %s3836_s17 = sshll.u32 %s3901_s22, 4  ;;  %s3837_s17 = int_to_ptr.vmem [resolvable:$false] %s3836_s17 }
  0x6a   : > { %v2323_v39 = vrot.slane %v275_v1, 2  ;;  %v1906_v63 = vpack.c.bf16 %v275_v1, %v274_v53  ;;  %s3838_s23 = scalar_lea.vmem %s3837_s17, 32  ;;  %p3839_p0 = scmp.lt.s32.totalorder %s4958_s11, %s3837_s17 }
  0x6b   : > { %p3840_p1 = scmp.lt.s32.totalorder %s3838_s23, %s3832_s16 }
  0x6d   : > { %3217 = vmatmul.mubr.msk.bf16.gmra.mrb[4].mxu1 %vm475_vm3, %v4324_v15  ;;  %p3841_p2 = por %p3840_p1, %p3839_p0 }
  0x6e   : > { %3220 = vmatprep.mubr.msk.bf16.mxu1 %vm475_vm3, %v4333_v33 }
  0x6f   : > { %3353 = vmatmul.mubr.msk.bf16.gmra.mrb[4].mxu0 %vm475_vm3, %v4351_v16  ;;  %p3842_p3 = pnand %p3841_p2, %p3835_p13 }
  0x70   : > { %3356 = vmatprep.mubr.msk.bf16.mxu0 %vm475_vm3, %v4368_v27 }
  0x75   : > { %3221 = vmatmul.mubr.msk.bf16.gmra.mrb[8].mxu1 %vm475_vm3, %v4356_v18 }
  0x76   : > { %3224 = vmatprep.mubr.msk.bf16.mxu1 %vm475_vm3, %v4366_v19 }
  0x77   : > { %3357 = vmatmul.mubr.msk.bf16.gmra.mrb[8].mxu0 %vm475_vm3, %v4380_v2 }
  0x78   : > { %3360 = vmatprep.mubr.msk.bf16.mxu0 %vm475_vm3, %v4387_v11 }
  0x7d   : > { %3225 = vmatmul.mubr.msk.bf16.gmra.mrb[12].mxu1 %vm475_vm3, %v4377_v43 }
  0x7e   : > { %3228 = vmatprep.mubr.msk.bf16.mxu1 %vm475_vm3, %v4392_v7 }
  0x7f   : > { %3361 = vmatmul.mubr.msk.bf16.gmra.mrb[12].mxu0 %vm475_vm3, %v4410_v23 }
  0x80   : > { %3364 = vmatprep.mubr.msk.bf16.mxu0 %vm475_vm3, %v4420_v38 }
  0x85   : > { %3229 = vmatmul.mubr.msk.bf16.gmra.mrb[16].mxu1 %vm475_vm3, %v4402_v48 }
  0x86   : > { %3232 = vmatprep.mubr.msk.bf16.mxu1 %vm475_vm3, %v4416_v30 }
  0x87   : > { %3365 = vmatmul.mubr.msk.bf16.gmra.mrb[16].mxu0 %vm475_vm3, %v4425_v3 }
  0x88   : > { %3368 = vmatprep.mubr.msk.bf16.mxu0 %vm475_vm3, %v4446_v51 }
  0x8d   : > { %3233 = vmatmul.mubr.msk.bf16.gmra.mrb[20].mxu1 %vm475_vm3, %v4431_v40 }
  0x8e   : > { %3236 = vmatprep.mubr.msk.bf16.mxu1 %vm475_vm3, %v4438_v29 }
  0x8f   : > { %3369 = vmatmul.mubr.msk.bf16.gmra.mrb[20].mxu0 %vm475_vm3, %v4453_v50 }
  0x90   : > { %3372 = vmatprep.mubr.msk.bf16.mxu0 %vm475_vm3, %v4470_v8 }
  0x95   : > { %3237 = vmatmul.mubr.msk.bf16.gmra.mrb[24].mxu1 %vm475_vm3, %v4458_v6 }
  0x96   : > { %3240 = vmatprep.mubr.msk.bf16.mxu1 %vm475_vm3, %v4466_v61 }
  0x97   : > { %3373 = vmatmul.mubr.msk.bf16.gmra.mrb[24].mxu0 %vm475_vm3, %v4488_v21 }
  0x98   : > { %3376 = vmatprep.mubr.msk.bf16.mxu0 %vm475_vm3, %v4493_v58 }
  0x9d   : > { %3241 = vmatmul.mubr.msk.bf16.gmra.mrb[28].mxu1 %vm475_vm3, %v4485_v25 }
  0x9e   : > { %3246 = vmatprep.mubr.msk.bf16.mxu1 %vm475_vm3, %v1017_v56  ;;  %v2322_v56 = vrot.slane %v274_v53, 2 }
  0x9f   : > { %3377 = vmatmul.mubr.msk.bf16.gmra.mrb[28].mxu0 %vm475_vm3, %v4529_v26 }
  0xa0   : > { %3382 = vmatprep.mubr.msk.bf16.mxu0 %vm475_vm3, %v4314_v14  ;;  %v2324_v62 = vsel %vm904_vm4, %v2322_v56, %v2323_v39 }
  0xa5   : > { %3247 = vmatmul.mubr.msk.bf16.vlgmr.msra.gmra.mrb[0].mxu1 %vm475_vm3, %v1018_v20  ;;  %v2325_v20 = vrot.slane %v276_v31, 2 }
  0xa6   : > { %3250 = vmatprep.mubr.msk.bf16.mxu1 %vm475_vm3, %v4320_v22  ;;  %3279 = vmatpush3.bf16.msra.mxu1 %v1288_v34 }
  0xa7   : > { %3383 = vmatmul.mubr.msk.bf16.vlgmr.msra.gmra.mrb[0].mxu0 %vm475_vm3, %v4324_v15  ;;  %v2326_v32 = vsel %vm904_vm4, %v2323_v39, %v2325_v20 }
  0xa8   : > { %3386 = vmatprep.mubr.msk.bf16.mxu0 %vm475_vm3, %v4333_v33  ;;  %3415 = vmatpush3.bf16.msra.mxu0 %v2127_v57  ;;  %v2329_v45 = vpack.c.bf16 %v2326_v32, %v2324_v62 }
  0xa9   : > { %3448 = vmatprep.subr.bf16.mxu0 %v2337_v46 }
  0xad   : > { %3251 = vmatmul.mubr.msk.bf16.gmra.mrb[4].mxu1 %vm475_vm3, %v4573_v12 }
  0xae   : > { %3254 = vmatprep.mubr.msk.bf16.mxu1 %vm475_vm3, %v4351_v16 }
  0xaf   : > { %3387 = vmatmul.mubr.msk.bf16.gmra.mrb[4].mxu0 %vm475_vm3, %v4356_v18 }
  0xb0   : > { %3390 = vmatprep.mubr.msk.bf16.mxu0 %vm475_vm3, %v4366_v19 }
  0xb5   : > { %3255 = vmatmul.mubr.msk.bf16.gmra.mrb[8].mxu1 %vm475_vm3, %v4368_v27 }
  0xb6   : > { %3258 = vmatprep.mubr.msk.bf16.mxu1 %vm475_vm3, %v4380_v2 }
  0xb7   : > { %3391 = vmatmul.mubr.msk.bf16.gmra.mrb[8].mxu0 %vm475_vm3, %v4377_v43 }
  0xb8   : > { %3394 = vmatprep.mubr.msk.bf16.mxu0 %vm475_vm3, %v4392_v7 }
  0xbd   : > { %3259 = vmatmul.mubr.msk.bf16.gmra.mrb[12].mxu1 %vm475_vm3, %v4387_v11 }
  0xbe   : > { %3262 = vmatprep.mubr.msk.bf16.mxu1 %vm475_vm3, %v4410_v23 }
  0xbf   : > { %3395 = vmatmul.mubr.msk.bf16.gmra.mrb[12].mxu0 %vm475_vm3, %v4402_v48 }
  0xc0   : > { %3398 = vmatprep.mubr.msk.bf16.mxu0 %vm475_vm3, %v4416_v30 }
  0xc5   : > { %3263 = vmatmul.mubr.msk.bf16.gmra.mrb[16].mxu1 %vm475_vm3, %v4420_v38 }
  0xc6   : > { %3266 = vmatprep.mubr.msk.bf16.mxu1 %vm475_vm3, %v4425_v3 }
  0xc7   : > { %3399 = vmatmul.mubr.msk.bf16.gmra.mrb[16].mxu0 %vm475_vm3, %v4431_v40 }
  0xc8   : > { %3402 = vmatprep.mubr.msk.bf16.mxu0 %vm475_vm3, %v4438_v29 }
  0xcd   : > { %3267 = vmatmul.mubr.msk.bf16.gmra.mrb[20].mxu1 %vm475_vm3, %v4446_v51 }
  0xce   : > { %3270 = vmatprep.mubr.msk.bf16.mxu1 %vm475_vm3, %v4453_v50 }
  0xcf   : > { %3403 = vmatmul.mubr.msk.bf16.gmra.mrb[20].mxu0 %vm475_vm3, %v4458_v6 }
  0xd0   : > { %3406 = vmatprep.mubr.msk.bf16.mxu0 %vm475_vm3, %v4466_v61 }
  0xd5   : > { %3271 = vmatmul.mubr.msk.bf16.gmra.mrb[24].mxu1 %vm475_vm3, %v4470_v8 }
  0xd6   : > { %3274 = vmatprep.mubr.msk.bf16.mxu1 %vm475_vm3, %v4488_v21 }
  0xd7   : > { %3407 = vmatmul.mubr.msk.bf16.gmra.mrb[24].mxu0 %vm475_vm3, %v4485_v25 }
  0xd8   : > { %3410 = vmatprep.mubr.msk.bf16.mxu0 %vm475_vm3, %v4535_v41 }
  0xdd   : > { %3275 = vmatmul.mubr.msk.bf16.gmra.mrb[28].mxu1 %vm475_vm3, %v4493_v58 }
  0xde   : > { %3280 = vmatprep.mubr.msk.bf16.mxu1 %vm475_vm3, %v5062_v0 }
  0xdf   : > { %3411 = vmatmul.mubr.msk.bf16.gmra.mrb[28].mxu0 %vm475_vm3, %v1906_v63 }
  0xe0   : > { %3416 = vmatprep.mubr.msk.bf16.mxu0 %vm475_vm3, %v5064_v49 }
  0xe5   : > { %3281 = vmatmul.mubr.msk.bf16.vlgmr.msra.gmra.mrb[0].mxu1 %vm475_vm3, %v4314_v14  ;;  %v5068_v14 = vld [vmem:[#allocation21_spill] sm:$0xff] }
  0xe6   : > { %3284 = vmatprep.mubr.msk.bf16.mxu1 %vm475_vm3, %v4324_v15 }
  0xe7   : > { %3417 = vmatmul.mubr.msk.bf16.vlgmr.msra.gmra.mrb[0].mxu0 %vm475_vm3, %v5065_v17 }
  0xe8   : > { %3420 = vmatprep.mubr.msk.bf16.mxu0 %vm475_vm3, %v5066_v44  ;;  %3449 = vmatpush3.bf16.msra.mxu0 %v2337_v46 }
  0xed   : > { %3285 = vmatmul.mubr.msk.bf16.gmra.mrb[4].mxu1 %vm475_vm3, %v4333_v33 }
  0xee   : > { %3288 = vmatprep.mubr.msk.bf16.mxu1 %vm475_vm3, %v4356_v18 }
  0xef   : > { %3421 = vmatmul.mubr.msk.bf16.gmra.mrb[4].mxu0 %vm475_vm3, %v5067_v24 }
  0xf0   : > { %3424 = vmatprep.mubr.msk.bf16.mxu0 %vm475_vm3, %v5068_v14 }
  0xf5   : > { %3289 = vmatmul.mubr.msk.bf16.gmra.mrb[8].mxu1 %vm475_vm3, %v4366_v19 }
  0xf6   : > { %3292 = vmatprep.mubr.msk.bf16.mxu1 %vm475_vm3, %v4377_v43  ;;  %v3897_v43 = vmov 0.00390625  }
  0xf7   : > { %3425 = vmatmul.mubr.msk.bf16.gmra.mrb[8].mxu0 %vm475_vm3, %v4235_v5  ;;  %v2112_v5 = vrot.slane %v274_v53, 1 }
  0xf8   : > { %3428 = vmatprep.mubr.msk.bf16.mxu0 %vm475_vm3, %v4274_v42  ;;  %v2113_v42 = vrot.slane %v275_v1, 1 }
  0xfd   : > { %3293 = vmatmul.mubr.msk.bf16.gmra.mrb[12].mxu1 %vm475_vm3, %v4392_v7 }
  0xfe   : > { %3296 = vmatprep.mubr.msk.bf16.mxu1 %vm475_vm3, %v4402_v48 }
  0xff   : > { %3429 = vmatmul.mubr.msk.bf16.gmra.mrb[12].mxu0 %vm475_vm3, %v4282_v54  ;;  %v2115_v54 = vrot.slane %v276_v31, 1 }
 0x100   : > { %3432 = vmatprep.mubr.msk.bf16.mxu0 %vm475_vm3, %v4284_v59 }
 0x101   : > { %v2116_v59 = vsel %vm343_vm2, %v2113_v42, %v2115_v54 }
 0x105   : > { %3297 = vmatmul.mubr.msk.bf16.gmra.mrb[16].mxu1 %vm475_vm3, %v4416_v30 }
 0x106   : > { %3300 = vmatprep.mubr.msk.bf16.mxu1 %vm475_vm3, %v4431_v40 }
 0x107   : > { %3433 = vmatmul.mubr.msk.bf16.gmra.mrb[16].mxu0 %vm475_vm3, %v4286_v4 }
 0x108   : > { %3436 = vmatprep.mubr.msk.bf16.mxu0 %vm475_vm3, %v4288_v35 }
 0x10d   : > { %3301 = vmatmul.mubr.msk.bf16.gmra.mrb[20].mxu1 %vm475_vm3, %v4438_v29 }
 0x10e   : > { %3304 = vmatprep.mubr.msk.bf16.mxu1 %vm475_vm3, %v4458_v6 }
 0x10f   : > { %3437 = vmatmul.mubr.msk.bf16.gmra.mrb[20].mxu0 %vm475_vm3, %v4293_v28  ;;  %v2114_v28 = vsel %vm343_vm2, %v2112_v5, %v2113_v42 }
 0x110   : > { %3440 = vmatprep.mubr.msk.bf16.mxu0 %vm475_vm3, %v4504_v13  ;;  %v2119_v4 = vpack.c.bf16 %v2116_v59, %v2114_v28 }
 0x115   : > { %3305 = vmatmul.mubr.msk.bf16.gmra.mrb[24].mxu1 %vm475_vm3, %v4466_v61 }
 0x116   : > { %3308 = vmatprep.mubr.msk.bf16.mxu1 %vm475_vm3, %v4485_v25 }
 0x117   : > { %3441 = vmatmul.mubr.msk.bf16.gmra.mrb[24].mxu0 %vm475_vm3, %v4518_v10 }
 0x118   : > { %3444 = vmatprep.mubr.msk.bf16.mxu0 %vm475_vm3, %v4551_v55 }
 0x11d   : > { %3309 = vmatmul.mubr.msk.bf16.gmra.mrb[28].mxu1 %vm475_vm3, %v4535_v41 }
 0x11e   : > { %2667 = vmatprep.mubr.f32.mxu1 %v3897_v43 }
 0x11f   : > { %3445 = vmatmul.mubr.msk.bf16.gmra.mrb[28].mxu0 %vm475_vm3, %v2119_v4 }
 0x120   : > { %3450 = vmatprep.mubr.msk.bf16.mxu0 %vm475_vm3, %v4320_v22 }
 0x127   : > { %3451 = vmatmul.mubr.msk.bf16.vlgmr.msra.gmra.mrb[0].mxu0 %vm475_vm3, %v4573_v12 }
 0x128   : > { %3454 = vmatprep.mubr.msk.bf16.mxu0 %vm475_vm3, %v4351_v16 }
 0x12f   : > { %3455 = vmatmul.mubr.msk.bf16.gmra.mrb[4].mxu0 %vm475_vm3, %v4368_v27 }
 0x130   : > { %3458 = vmatprep.mubr.msk.bf16.mxu0 %vm475_vm3, %v4380_v2 }
 0x137   : > { %3459 = vmatmul.mubr.msk.bf16.gmra.mrb[8].mxu0 %vm475_vm3, %v4387_v11 }
 0x138   : > { %3462 = vmatprep.mubr.msk.bf16.mxu0 %vm475_vm3, %v4410_v23 }
 0x13f   : > { %3463 = vmatmul.mubr.msk.bf16.gmra.mrb[12].mxu0 %vm475_vm3, %v4420_v38 }
 0x140   : > { %3466 = vmatprep.mubr.msk.bf16.mxu0 %vm475_vm3, %v4425_v3 }
 0x147   : > { %3467 = vmatmul.mubr.msk.bf16.gmra.mrb[16].mxu0 %vm475_vm3, %v4446_v51 }
 0x148   : > { %3470 = vmatprep.mubr.msk.bf16.mxu0 %vm475_vm3, %v4453_v50 }
 0x14f   : > { %3471 = vmatmul.mubr.msk.bf16.gmra.mrb[20].mxu0 %vm475_vm3, %v4470_v8 }
 0x150   : > { %3474 = vmatprep.mubr.msk.bf16.mxu0 %vm475_vm3, %v4488_v21 }
 0x157   : > { %3475 = vmatmul.mubr.msk.bf16.gmra.mrb[24].mxu0 %vm475_vm3, %v4493_v58 }
 0x158   : > { %3478 = vmatprep.mubr.msk.bf16.mxu0 %vm475_vm3, %v4529_v26 }
 0x15f   : > { %3479 = vmatmul.mubr.msk.bf16.gmra.mrb[28].mxu0 %vm475_vm3, %v2329_v45 }
 0x1b8   : > { %v3282_v35 = vpop.f32.mrb[0].mxu1 }
 0x1b9   : > { %v1324_v18 = vpop.f32.mrb[1].mxu1 }
 0x1ba   : > { %v3283_v22 = vpop.f32.mrb[2].mxu1 }
 0x1bb   : > { %v1327_v15 = vpop.f32.mrb[3].mxu1 }
 0x1c0   : > { %v3286_v33 = vpop.f32.mrb[4].mxu1 }
 0x1c1   : > { %v1340_v16 = vpop.f32.mrb[5].mxu1 }
 0x1c2   : > { %v3287_v19 = vpop.f32.mrb[6].mxu1 }
 0x1c3   : > { %v1343_v27 = vpop.f32.mrb[7].mxu1 }
 0x1c8   : > { %v3290_v2 = vpop.f32.mrb[8].mxu1 }
 0x1c9   : > { %v4805_v11 = vpop.f32.mrb[9].mxu1 }
 0x1ca   : > { %v4807_v7 = vpop.f32.mrb[10].mxu1 }
 0x1cb   : > { %v4809_v48 = vpop.f32.mrb[11].mxu1 }
 0x1d0   : > { %v4811_v23 = vpop.f32.mrb[12].mxu1 }
 0x1d1   : > { %v4813_v30 = vpop.f32.mrb[13].mxu1 }
 0x1d2   : > { %v4815_v38 = vpop.f32.mrb[14].mxu1 }
 0x1d3   : > { %v4817_v3 = vpop.f32.mrb[15].mxu1 }
 0x1d8   : > { %v4819_v40 = vpop.f32.mrb[16].mxu1 }
 0x1d9   : > { %v4821_v29 = vpop.f32.mrb[17].mxu1 }
 0x1da   : > { %v4823_v51 = vpop.f32.mrb[18].mxu1 }
 0x1db   : > { %v4825_v50 = vpop.f32.mrb[19].mxu1 }
 0x1e0   : > { %v4827_v6 = vpop.f32.mrb[20].mxu1 }
 0x1e1   : > { %v4829_v61 = vpop.f32.mrb[21].mxu1 }
 0x1e2   : > { %v4831_v8 = vpop.f32.mrb[22].mxu1 }
 0x1e3   : > { %v4833_v25 = vpop.f32.mrb[23].mxu1 }
 0x1e8   : > { %v4835_v21 = vpop.f32.mrb[24].mxu1 }
 0x1e9   : > { %v4837_v58 = vpop.f32.mrb[25].mxu1 }
 0x1ea   : > { %v4839_v13 = vpop.f32.mrb[26].mxu1 }
 0x1eb   : > { %v4841_v10 = vpop.f32.mrb[27].mxu1 }
 0x1f0   : > { %v4843_v26 = vpop.f32.mrb[28].mxu1 }
 0x1f1   : > { %v4845_v41 = vpop.f32.mrb[29].mxu1 }
 0x1f2   : > { %v4847_v55 = vpop.f32.mrb[30].mxu1 }
 0x1f3   : > { %v4849_v36 = vpop.f32.mrb[31].mxu1 }
 0x1fa   : > { %v3452_v37 = vpop.f32.mrb[0].mxu0 }
 0x1fb   : > { %v3531_v34 = vadd.f32 %v3452_v37, %v3282_v35  ;;  %v2373_v0 = vpop.f32.mrb[1].mxu0 }
 0x1fc   : > { %v3532_v12 = vadd.f32 %v2373_v0, %v1324_v18  ;;  %v3453_v57 = vpop.f32.mrb[2].mxu0 }
 0x1fd   : > { %v2541_v52 = vadd.f32 %v3531_v34, %v4854_v60  ;;  %v3533_v9 = vadd.f32 %v3453_v57, %v3283_v22  ;;  %v2376_v47 = vpop.f32.mrb[3].mxu0 }
 0x1fe   : > { %v2539_v46 = vadd.f32 %v3532_v12, %v4854_v60  ;;  %v3534_v53 = vadd.f32 %v2376_v47, %v1327_v15 }
 0x1ff   : > { %v2542_v1 = vadd.f32 %v3533_v9, %v4854_v60  ;;  %v2573_v39 = vmax.f32 %v2541_v52, 0.0 }
 0x200   : > { %v2540_v56 = vadd.f32 %v3534_v53, %v4854_v60  ;;  %v2571_v62 = vmax.f32 %v2539_v46, 0.0 }
 0x201   : > { %v2574_v31 = vmax.f32 %v2542_v1, 0.0 }
 0x202   : > { %v2572_v20 = vmax.f32 %v2540_v56, 0.0  ;;  %v3456_v32 = vpop.f32.mrb[4].mxu0 }
 0x203   : > { %v4860_v63 = vpack.c.bf16 %v2574_v31, %v2573_v39  ;;  %v3535_v45 = vadd.f32 %v3456_v32, %v3286_v33  ;;  %v2389_v49 = vpop.f32.mrb[5].mxu0 }
 0x204   : > { %v4862_v17 = vpack.c.bf16 %v2572_v20, %v2571_v62  ;;  %v3536_v44 = vadd.f32 %v2389_v49, %v1340_v16  ;;  %v3457_v24 = vpop.f32.mrb[6].mxu0 }
 0x205   : > { %v2545_v14 = vadd.f32 %v3535_v45, %v4854_v60  ;;  %v3537_v5 = vadd.f32 %v3457_v24, %v3287_v19  ;;  %v2392_v42 = vpop.f32.mrb[7].mxu0 }
 0x206   : > { %v2543_v54 = vadd.f32 %v3536_v44, %v4854_v60  ;;  %v3538_v28 = vadd.f32 %v2392_v42, %v1343_v27 }
 0x207   : > { %v2546_v59 = vadd.f32 %v3537_v5, %v4854_v60  ;;  %v2577_v35 = vmax.f32 %v2545_v14, 0.0 }
 0x208   : > { %v2544_v4 = vadd.f32 %v3538_v28, %v4854_v60  ;;  %v2575_v22 = vmax.f32 %v2543_v54, 0.0 }
 0x209   : > { %v2578_v18 = vmax.f32 %v2546_v59, 0.0 }
 0x20a   : > { %v2576_v15 = vmax.f32 %v2544_v4, 0.0  ;;  %v3460_v33 = vpop.f32.mrb[8].mxu0 }
 0x20b   : > { %v4868_v37 = vpack.c.bf16 %v2578_v18, %v2577_v35  ;;  %v3539_v16 = vadd.f32 %v3460_v33, %v3290_v2  ;;  %v2405_v34 = vpop.f32.mrb[9].mxu0 }
 0x20c   : > { %v4870_v0 = vpack.c.bf16 %v2576_v15, %v2575_v22  ;;  %v3540_v19 = vadd.f32 %v2405_v34, %v4805_v11  ;;  %v3461_v12 = vpop.f32.mrb[10].mxu0 }
 0x20d   : > { %v2549_v27 = vadd.f32 %v3539_v16, %v4854_v60  ;;  %v3541_v57 = vadd.f32 %v3461_v12, %v4807_v7  ;;  %v2408_v52 = vpop.f32.mrb[11].mxu0 }
 0x20e   : > { %v2547_v9 = vadd.f32 %v3540_v19, %v4854_v60  ;;  %v3542_v47 = vadd.f32 %v2408_v52, %v4809_v48 }
 0x20f   : > { %v2550_v46 = vadd.f32 %v3541_v57, %v4854_v60  ;;  %v2581_v2 = vmax.f32 %v2549_v27, 0.0 }
 0x210   : > { %v2548_v53 = vadd.f32 %v3542_v47, %v4854_v60  ;;  %v2579_v56 = vmax.f32 %v2547_v9, 0.0 }
 0x211   : > { %v2582_v1 = vmax.f32 %v2550_v46, 0.0 }
 0x212   : > { %v2580_v39 = vmax.f32 %v2548_v53, 0.0  ;;  %v3464_v31 = vpop.f32.mrb[12].mxu0 }
 0x213   : > { %v4879_v11 = vpack.c.bf16 %v2582_v1, %v2581_v2  ;;  %v3543_v62 = vadd.f32 %v3464_v31, %v4811_v23  ;;  %v2421_v20 = vpop.f32.mrb[13].mxu0 }
 0x214   : > { %v4882_v7 = vpack.c.bf16 %v2580_v39, %v2579_v56  ;;  %v3544_v32 = vadd.f32 %v2421_v20, %v4813_v30  ;;  %v3465_v45 = vpop.f32.mrb[14].mxu0 }
 0x215   : > { %v2553_v48 = vadd.f32 %v3543_v62, %v4854_v60  ;;  %v3545_v49 = vadd.f32 %v3465_v45, %v4815_v38  ;;  %v2424_v44 = vpop.f32.mrb[15].mxu0 }
 0x216   : > { %v2551_v24 = vadd.f32 %v3544_v32, %v4854_v60  ;;  %v3546_v14 = vadd.f32 %v2424_v44, %v4817_v3 }
 0x217   : > { %v2554_v5 = vadd.f32 %v3545_v49, %v4854_v60  ;;  %v2585_v23 = vmax.f32 %v2553_v48, 0.0 }
 0x218   : > { %v2552_v42 = vadd.f32 %v3546_v14, %v4854_v60  ;;  %v2583_v28 = vmax.f32 %v2551_v24, 0.0 }
 0x219   : > { %v2586_v54 = vmax.f32 %v2554_v5, 0.0 }
 0x21a   : > { %v2584_v59 = vmax.f32 %v2552_v42, 0.0  ;;  %v3468_v4 = vpop.f32.mrb[16].mxu0 }
 0x21b   : > { %v4891_v30 = vpack.c.bf16 %v2586_v54, %v2585_v23  ;;  %v3547_v35 = vadd.f32 %v3468_v4, %v4819_v40  ;;  %v2437_v18 = vpop.f32.mrb[17].mxu0 }
 0x21c   : > { %v4894_v38 = vpack.c.bf16 %v2584_v59, %v2583_v28  ;;  %v3548_v22 = vadd.f32 %v2437_v18, %v4821_v29  ;;  %v3469_v15 = vpop.f32.mrb[18].mxu0 }
 0x21d   : > { %v2557_v3 = vadd.f32 %v3547_v35, %v4854_v60  ;;  %v3549_v33 = vadd.f32 %v3469_v15, %v4823_v51  ;;  %v2440_v16 = vpop.f32.mrb[19].mxu0 }
 0x21e   : > { %v2555_v34 = vadd.f32 %v3548_v22, %v4854_v60  ;;  %v3550_v19 = vadd.f32 %v2440_v16, %v4825_v50 }
 0x21f   : > { %v2558_v12 = vadd.f32 %v3549_v33, %v4854_v60  ;;  %v2589_v40 = vmax.f32 %v2557_v3, 0.0 }
 0x220   : > { %v2556_v27 = vadd.f32 %v3550_v19, %v4854_v60  ;;  %v2587_v52 = vmax.f32 %v2555_v34, 0.0 }
 0x221   : > { %v2590_v57 = vmax.f32 %v2558_v12, 0.0 }
 0x222   : > { %v2588_v9 = vmax.f32 %v2556_v27, 0.0  ;;  %v3472_v47 = vpop.f32.mrb[20].mxu0 }
 0x223   : > { %v3551_v29 = vadd.f32 %v3472_v47, %v4827_v6  ;;  %v2453_v46 = vpop.f32.mrb[21].mxu0  ;;  %v3497_v53 = vpack.c.bf16 %v2590_v57, %v2589_v40 }
 0x224   : > { %v3552_v51 = vadd.f32 %v2453_v46, %v4829_v61  ;;  %v3473_v2 = vpop.f32.mrb[22].mxu0  ;;  %v3493_v1 = vpack.c.bf16 %v2588_v9, %v2587_v52  ;;  %v3898_v9 = vmov 0.0|0.0  }
 0x225   : > { %v2561_v56 = vadd.f32 %v3551_v29, %v4854_v60  ;;  %v3553_v50 = vadd.f32 %v3473_v2, %v4831_v8  ;;  %v2456_v39 = vpop.f32.mrb[23].mxu0 }
 0x226   : > { %v2559_v31 = vadd.f32 %v3552_v51, %v4854_v60  ;;  %v3554_v62 = vadd.f32 %v2456_v39, %v4833_v25  ;;  %3494 = vmatprep.subr.bf16.mxu1 %v3493_v1 }
 0x227   : > { %v2562_v20 = vadd.f32 %v3553_v50, %v4854_v60  ;;  %3496 = vmatpush3.bf16.msra.mxu1 %v4862_v17  ;;  %v2593_v61 = vmax.f32 %v2561_v56, 0.0 }
 0x228   : > { %v2560_v6 = vadd.f32 %v3554_v62, %v4854_v60  ;;  %3498 = vmatprep.subr.bf16.mxu1 %v3497_v53  ;;  %v2591_v45 = vmax.f32 %v2559_v31, 0.0  ;;  %v2677_v53 = vld [vmem:[%s5002_s4] sm:$0x1] }
 0x229   : > { %v2594_v32 = vmax.f32 %v2562_v20, 0.0 }
 0x22a   : > { %v2592_v48 = vmax.f32 %v2560_v6, 0.0  ;;  %v3476_v49 = vpop.f32.mrb[24].mxu0 }
 0x22b   : > { %v3555_v8 = vadd.f32 %v3476_v49, %v4835_v21  ;;  %v2469_v44 = vpop.f32.mrb[25].mxu0  ;;  %3500 = vmatpush3.bf16.msra.mxu1 %v4860_v63  ;;  %v3505_v24 = vpack.c.bf16 %v2594_v32, %v2593_v61 }
 0x22c   : > { %v3556_v25 = vadd.f32 %v2469_v44, %v4837_v58  ;;  %v3477_v14 = vpop.f32.mrb[26].mxu0  ;;  %v3501_v5 = vpack.c.bf16 %v2592_v48, %v2591_v45 }
 0x22d   : > { %v2565_v17 = vadd.f32 %v3555_v8, %v4854_v60  ;;  %v3557_v42 = vadd.f32 %v3477_v14, %v4839_v13  ;;  %v2472_v23 = vpop.f32.mrb[27].mxu0 }
 0x22e   : > { %v2563_v54 = vadd.f32 %v3556_v25, %v4854_v60  ;;  %v3558_v28 = vadd.f32 %v2472_v23, %v4841_v10  ;;  %3502 = vmatprep.subr.bf16.mxu1 %v3501_v5 }
 0x22f   : > { %v2566_v21 = vadd.f32 %v3557_v42, %v4854_v60  ;;  %3504 = vmatpush3.bf16.msra.mxu1 %v4870_v0  ;;  %v2597_v58 = vmax.f32 %v2565_v17, 0.0 }
 0x230   : > { %v2564_v63 = vadd.f32 %v3558_v28, %v4854_v60  ;;  %3506 = vmatprep.subr.bf16.mxu1 %v3505_v24  ;;  %v2595_v4 = vmax.f32 %v2563_v54, 0.0 }
 0x231   : > { %v2598_v59 = vmax.f32 %v2566_v21, 0.0 }
 0x232   : > { %v2596_v35 = vmax.f32 %v2564_v63, 0.0  ;;  %v3480_v18 = vpop.f32.mrb[28].mxu0 }
 0x233   : > { %v3559_v13 = vadd.f32 %v3480_v18, %v4843_v26  ;;  %v2485_v22 = vpop.f32.mrb[29].mxu0  ;;  %3508 = vmatpush3.bf16.msra.mxu1 %v4868_v37  ;;  %v3513_v15 = vpack.c.bf16 %v2598_v59, %v2597_v58 }
 0x234   : > { %v3560_v10 = vadd.f32 %v2485_v22, %v4845_v41  ;;  %v3481_v3 = vpop.f32.mrb[30].mxu0  ;;  %v3509_v33 = vpack.c.bf16 %v2596_v35, %v2595_v4 }
 0x235   : > { %v2569_v0 = vadd.f32 %v3559_v13, %v4854_v60  ;;  %v3561_v16 = vadd.f32 %v3481_v3, %v4847_v55  ;;  %v2488_v34 = vpop.f32.mrb[31].mxu0 }
 0x236   : > { %v2567_v19 = vadd.f32 %v3560_v10, %v4854_v60  ;;  %v3562_v12 = vadd.f32 %v2488_v34, %v4849_v36  ;;  %3510 = vmatprep.subr.bf16.mxu1 %v3509_v33  ;;  %v2673_v36 = vld [vmem:[%s5001_s3] sm:$0xff] }
 0x237   : > { %v2570_v26 = vadd.f32 %v3561_v16, %v4854_v60  ;;  %3512 = vmatpush3.bf16.msra.mxu1 %v4882_v7  ;;  %v2601_v41 = vmax.f32 %v2569_v0, 0.0 }
 0x238   : > { %v2568_v37 = vadd.f32 %v3562_v12, %v4854_v60  ;;  %3514 = vmatprep.subr.bf16.mxu1 %v3513_v15  ;;  %v2599_v40 = vmax.f32 %v2567_v19, 0.0  ;;  %v2674_v60 = vld [vmem:[%s5001_s3 + $0x8] sm:$0xff] }
 0x239   : > { %v2602_v27 = vmax.f32 %v2570_v26, 0.0  ;;  %v3526_v7 = vpack.c.bf16 %v2674_v60, %v2673_v36 }
 0x23a   : > { %v2600_v57 = vmax.f32 %v2568_v37, 0.0 }
 0x23b   : > { %3516 = vmatpush3.bf16.msra.mxu1 %v4879_v11  ;;  %v3521_v55 = vpack.c.bf16 %v2602_v27, %v2601_v41  ;;  %v2675_v11 = vld [vmem:[%s5001_s3 + $0x10] sm:$0xff] }
 0x23c   : > { %v3517_v52 = vpack.c.bf16 %v2600_v57, %v2599_v40 }
 0x23e   : > { %3518 = vmatprep.subr.bf16.mxu1 %v3517_v52 }
 0x23f   : > { %3520 = vmatpush3.bf16.msra.mxu1 %v4894_v38  ;;  %v2676_v38 = vld [vmem:[%s5001_s3 + $0x18] sm:$0xff] }
 0x240   : > { %3522 = vmatprep.subr.bf16.mxu1 %v3521_v55  ;;  %v3529_v47 = vpack.c.bf16 %v2676_v38, %v2675_v11 }
 0x243   : > { %3524 = vmatpush3.bf16.msra.mxu1 %v4891_v30  ;;  %v3900_v30 = vmov 0.0  }
 0x244   : > { %3525 = vmatprep.subr.bf16.mxu1 %v3898_v9 }
 0x246   : > { %2668 = vmatmul.mubr.f32.vlgmr.msra.gmra.mrb[32].mxu1 %v3897_v43 }
 0x247   : > { %3527 = vmatpush3.bf16.msra.mxu1 %v3526_v7  ;;  %3490 = vmatprep.mubr.msk.f32.mxu1 %vm3899_vm5, %v3900_v30 }
 0x248   : > { %3528 = vmatprep.subr.bf16.mxu1 %v3898_v9 }
 0x24b   : > { %3530 = vmatpush3.bf16.msra.mxu1 %v3529_v47 }
 0x319   : > { %v3168_v29 = vpop.f32.mrb[32].mxu1 }
 0x31a   : > { %v3169_v46 = vpop.f32.mrb[33].mxu1 }
 0x31b   : > { %v3170_v43 = vadd.f32 %v3169_v46, %v3168_v29 }
 0x31d   : > { %3491 = vmatmul.mubr.msk.f32.vlgmr.msra.gmra.mrb[34].mxu1 %vm2678_vm6, %v3170_v43 }
 0x3f0   : > { %v2748_v51 = vpop.f32.mrb[34].mxu1 }
 0x3f1   : > { %v2749_v2 = vadd.f32 %v2748_v51, %v2677_v53  ;;  %v3492_v1 = vpop.f32.mrb[35].mxu1 }
 0x3f3   : > { %2752 = vst [vmem:[%s216_s10] sm:$0x1] %v2749_v2 }
 0x3f4   : > { %3845 = shalt.err (!%p3842_p3)
}
 0x3f5   : > { %s3846_s25 = scalar_lea.hbm %s4956_s14, 16  ;;  %s3850_s6 = scalar_lea.hbm %s5003_s5, 32 }
 0x3f6   : > { %p3847_p4 = scmp.ne.s32.totalorder %s4956_s14, %s3846_s25  ;;  %p3851_p9 = scmp.lt.u32.totalorder %s4956_s14, %s5003_s5 }
 0x3f7   : > { %p3852_p10 = scmp.lt.u32.totalorder %s3850_s6, %s3846_s25  ;;  %p3854_p12 = scmp.lt.u32.totalorder %s3846_s25, %s4956_s14 }
 0x3f8   : > { %p3848_p7 = pnand %p3847_p4, %p3970_p5 }
 0x3f9   : > { %p3853_p11 = por %p3852_p10, %p3851_p9 }
 0x3fa   : > { %p3849_p8 = pneg %p3848_p7 }
 0x3fb   : > { %p3855_p13 = por %p3854_p12, %p3853_p11 }
 0x3fd   : > { %p3856_p0 = pnand %p3855_p13, %p3849_p8 }
 0x3ff   : > { %3859 = shalt.err (!%p3856_p0)
}
 0x400   : > { %3788 = dma.vmem_to_hbm [thread:$0]  (%p3970_p5), %s4958_s11, 16, %s4956_s14, %s2754_s15  }
 0x401 PF: > { %p3794_p1 = scmp.ge.s32.totalorder %s3894_s21, 2  ;;  %s2778_s9 = sand.u32 1, %s3882_s18  }
 0x402   : > { %s2779_s10 = scalar_lea.sflag [#allocation3], %s2778_s9 }
 0x403   : > { %p3791_p2 = pnand %p3794_p1, %p3974_p6 }
 0x405   : > { %3877 = dma.done.wait (!%p3791_p2), %s2779_s10, 16  }
 0x406   : > { %3879 = vsyncadd (!%p3791_p2), %s2779_s10, 4294967280  ;;  %p15_p3 = scmp.ge.s32.totalorder %s3957_s24, 4   ;;  %s5069_s18 = smov %s3886_s19 }
 0x407   : > { %s5070_s19 = smov %s3890_s20  ;;  %s5071_s20 = smov %s3968_s27 }
 0x408   : > { %s5072_s21 = smov %s3957_s24  ;;  %17 = sbr.rel (!%p15_p3) target bundleno = 3 (0x3), region = 83 }
 0x40f   :  { %2783 = vsyncpa [#allocation3], 1 }
 0x410   :  { %2785 = vsyncpa [#allocation3 + $0x1], 1 }

</bundles_post_ra>
